<compile_context>
chip_gen: v7x
topology: tpu7x:2x2x1
jax: 0.10.0
libtpu: 0.0.40
codegen_flags: <defaults>
</compile_context>

<pallas_src>
import functools
import math

import jax
import jax.numpy as jnp
from jax.experimental import pallas as pl
from jax.experimental.pallas import tpu as pltpu


F32 = jnp.float32
_VMEM = pl.BlockSpec(memory_space=pltpu.MemorySpace.VMEM)
_SMEM = pl.BlockSpec(memory_space=pltpu.MemorySpace.SMEM)


# ----------------------------------------------------------------------------
# Pallas kernels
# ----------------------------------------------------------------------------

def _dgcnn_stack_kernel(a_ref, x_ref, *rest):
    """Fused DGCNN GCN stack: h_{l+1} = tanh(A_hat @ (h_l @ W_l) + b_l), all layers one kernel.

    rest = (w_0, b_0, ..., w_{L-1}, b_{L-1}, o_ref). Layer outputs are concatenated in
    registers and written with a single store; XW intermediates never leave VMEM/vregs.
    """
    o_ref = rest[-1]
    wb_refs = rest[:-1]
    a = a_ref[...]
    h = x_ref[...]
    outs = []
    for i in range(0, len(wb_refs), 2):
        w_ref, b_ref = wb_refs[i], wb_refs[i + 1]
        xw = jnp.dot(h, w_ref[...], preferred_element_type=jnp.float32)
        h = jnp.tanh(jnp.dot(a, xw, preferred_element_type=jnp.float32) + b_ref[...])
        outs.append(h)
    o_ref[...] = jnp.concatenate(outs, axis=-1)


def dgcnn_gcn_stack(a_hat, x, wb_list):
    n = x.shape[0]
    total = sum(int(w.shape[1]) for w, _ in wb_list)
    flat = []
    for w, b in wb_list:
        flat += [w, b]
    return pl.pallas_call(
        _dgcnn_stack_kernel,
        out_shape=jax.ShapeDtypeStruct((n, total), F32),
        in_specs=[_VMEM] * (2 + len(flat)),
        out_specs=_VMEM,
    )(a_hat, x, *flat)


def _knn_gcn_gather_kernel(tgt_ref, a_ref, x_ref, w1_ref, b1_ref, w2_ref, b2_ref,
                           o_ref, g_scratch, *, num_pairs):
    """Fused 2-layer GCN + in-kernel target-node gather and even/odd pair sum.

    relu(A (X W1) + b1) -> A (h W2) + b2 is written to a VMEM scratch; rows indexed by the
    SMEM target_nodes array are gathered with scalar-dynamic pl.ds reads, paired, and the
    resulting [num_pairs, out_ch] emb_2 stored with a single store.
    """
    a = a_ref[...]
    h = jnp.dot(x_ref[...], w1_ref[...], preferred_element_type=jnp.float32)
    h = jnp.maximum(jnp.dot(a, h, preferred_element_type=jnp.float32) + b1_ref[...], 0.0)
    h = jnp.dot(h, w2_ref[...], preferred_element_type=jnp.float32)
    g_scratch[...] = jnp.dot(a, h, preferred_element_type=jnp.float32) + b2_ref[...]
    rows = []
    for b in range(num_pairs):
        i0 = tgt_ref[2 * b]
        i1 = tgt_ref[2 * b + 1]
        rows.append(g_scratch[pl.ds(i0, 1), :] + g_scratch[pl.ds(i1, 1), :])
    o_ref[...] = jnp.concatenate(rows, axis=0)


def knn_gcn_gather(target_nodes, a_hat, x, w1, b1, w2, b2, *, num_pairs):
    m = x.shape[0]
    out_ch = w2.shape[1]
    return pl.pallas_call(
        functools.partial(_knn_gcn_gather_kernel, num_pairs=int(num_pairs)),
        out_shape=jax.ShapeDtypeStruct((num_pairs, out_ch), F32),
        in_specs=[_SMEM] + [_VMEM] * 6,
        out_specs=_VMEM,
        scratch_shapes=[pltpu.VMEM((m, out_ch), F32)],
    )(target_nodes, a_hat, x, w1, b1, w2, b2)


def _fused_head_kernel(sp_ref, e2_ref, wc1_ref, bc1_ref, wc2_ref, bc2_ref,
                       wl1_ref, bl1_ref, wa1_ref, ba1_ref, wa2_ref, ba2_ref,
                       wq_ref, bq_ref, wo_ref, bo_ref, o_ref,
                       *, num_graphs, lp, lout, kw):
    """Fused post-sort-pool pipeline + BSAL head, one kernel.

    sp_ref rows are ordered (parity, batch, pooled-position) so MaxPool1d(2,2) is an
    elementwise max of two contiguous sublane slices. conv1/conv2 are matmuls (channels-last),
    im2col and the NCL->(L,C) flatten are static slices + concats on VMEM-resident values, and
    the three output linears are one block-diagonal matmul producing a lane-packed [B, 3].
    """
    pf = jnp.float32
    B = num_graphs

    # conv1 (Conv1d(1, C1, D, stride=D)) + ReLU; rows = (parity, b, p)
    c1 = jnp.maximum(
        jnp.dot(sp_ref[...], wc1_ref[...], preferred_element_type=pf) + bc1_ref[...], 0.0)

    # MaxPool1d(2, 2): max of the parity halves -> [B*Lp, C1], rows = b*Lp + p
    even = c1[0:B * lp, :]
    odd = c1[B * lp:2 * B * lp, :]
    pooled = jnp.maximum(even, odd)

    # im2col for conv2 (kernel-major, channel-minor columns) -> [B*Lout, KW*C1]
    blocks = []
    for b in range(B):
        taps = [pooled[b * lp + k0: b * lp + k0 + lout, :] for k0 in range(kw)]
        blocks.append(jnp.concatenate(taps, axis=1))
    cols = jnp.concatenate(blocks, axis=0)

    # conv2 + ReLU -> [B*Lout, C2], rows = b*Lout + l
    c2 = jnp.maximum(
        jnp.dot(cols, wc2_ref[...], preferred_element_type=pf) + bc2_ref[...], 0.0)

    # flatten to (L, C) lane order per batch -> [B, Lout*C2]  (wl1 rows are (l, c)-permuted)
    rows = []
    for b in range(B):
        rows.append(jnp.concatenate(
            [c2[b * lout + l: b * lout + l + 1, :] for l in range(lout)], axis=1))
    flat = jnp.concatenate(rows, axis=0)

    # DGCNN lin1 -> emb_1
    e1 = jnp.dot(flat, wl1_ref[...], preferred_element_type=pf) + bl1_ref[...]
    e2 = e2_ref[...]

    # attention fusion (numerically-stable exact softmax)
    h1 = jnp.tanh(jnp.dot(e1, wa1_ref[...], preferred_element_type=pf) + ba1_ref[...])
    h2 = jnp.tanh(jnp.dot(e2, wa2_ref[...], preferred_element_type=pf) + ba2_ref[...])
    att1 = jnp.dot(h1, wq_ref[...], preferred_element_type=pf) + bq_ref[...]
    att2 = jnp.dot(h2, wq_ref[...], preferred_element_type=pf) + bq_ref[...]
    m = jnp.maximum(att1, att2)
    ex1 = jnp.exp(att1 - m)
    ex2 = jnp.exp(att2 - m)
    inv = 1.0 / (ex1 + ex2)
    alpha_t = ex1 * inv
    alpha_f = ex2 * inv
    xfuse = alpha_t * e1 + alpha_f * e2

    # three output linears as ONE block-diagonal matmul + one store of a [B, 3] output
    lhs = jnp.concatenate([e1, e2, xfuse], axis=1)
    o_ref[...] = jnp.dot(lhs, wo_ref[...], preferred_element_type=pf) + bo_ref[...]


def fused_head(sp_re, emb_2, p, *, num_graphs):
    args = (sp_re, emb_2, p["wc1"], p["bc1"], p["wc2_km"], p["bc2"],
            p["wl1_lc"], p["bl1"], p["wa1"], p["ba1"], p["wa2"], p["ba2"],
            p["wq"], p["bq"], p["wo_blk"], p["bo"])
    return pl.pallas_call(
        functools.partial(_fused_head_kernel, num_graphs=int(num_graphs),
                          lp=p["lp"], lout=p["lout"], kw=p["conv2_kw"]),
        out_shape=jax.ShapeDtypeStruct((num_graphs, 3), F32),
        in_specs=[_VMEM] * len(args),
        out_specs=_VMEM,
    )(*args)


# ----------------------------------------------------------------------------
# JAX glue (graph preprocessing, sort-pool) and parameter packing
# ----------------------------------------------------------------------------

def normalized_adj(edge_index, num_nodes):
    """Dense GCN-normalized adjacency D^-1/2 (A + I) D^-1/2."""
    # TODO(synk): assumes edge_index has no pre-existing self-loops (PyG add_remaining_self_loops).
    A = jnp.zeros((num_nodes, num_nodes), F32)
    A = A.at[edge_index[0], edge_index[1]].set(1.0)
    A = A + jnp.eye(num_nodes, dtype=F32)
    deg = A.sum(axis=1)
    dinv = 1.0 / jnp.sqrt(deg)
    return A * dinv[:, None] * dinv[None, :]


def global_sort_pool(x, k, num_graphs, nodes_per_graph):
    """PyG global_sort_pool for equal-size graphs with nodes_per_graph >= k."""
    # TODO(synk): per-graph argsort kept in JAX glue (no clean Pallas sort primitive);
    #             assumes equal-size graphs with at least k nodes (no zero-padding branch).
    D = x.shape[-1]
    dense = x.reshape(num_graphs, nodes_per_graph, D)
    order = jnp.argsort(-dense[:, :, -1], axis=-1)            # descending by last channel
    sorted_x = jnp.take_along_axis(dense, order[:, :, None], axis=1)
    return sorted_x[:, :k]                                    # [B, k, D]


def init_linear(key, fan_in, fan_out, scale=0.1):
    kw, kb = jax.random.split(key)
    w = scale * jax.random.normal(kw, (fan_in, fan_out), F32)
    b = scale * jax.random.normal(kb, (fan_out,), F32)
    return w, b


def prepare_params(*, wg, bg, wc1, bc1, wc2, bc2, wl1, bl1,
                   wk1, bk1, wk2, bk2,
                   wa1, ba1, wa2, ba2, wq, bq,
                   wo1, bo1, wo2, bo2, wo3, bo3, k):
    """One-time host-side packing: f32 casts, (1,N) biases, layout foldings."""
    C2, C1, KW = wc2.shape            # [out=32, in=16, kernel=5]  (torch Conv1d layout)
    Lp = k // 2
    Lout = Lp - KW + 1
    out_ch = wl1.shape[1]

    f = lambda a: jnp.asarray(a, F32)
    rb = lambda b: f(b).reshape(1, -1)

    # Fold NCL layout plumbing into the weights so activations stay channels-last:
    #   conv2 weight -> columns ordered (kernel-major, channel-minor)
    wc2_km = jnp.transpose(f(wc2), (2, 1, 0)).reshape(KW * C1, C2)
    #   lin1 rows were (channel*Lout + l) [torch (C, L) flatten]; reorder to (l*C2 + channel)
    wl1_lc = f(wl1).reshape(C2, Lout, out_ch).transpose(1, 0, 2).reshape(Lout * C2, out_ch)

    gcn_wb = [(f(w), rb(b)) for w, b in zip(wg, bg)]
    total_latent_dim = int(sum(int(w.shape[1]) for w in wg))

    # block-diagonal output weight: one matmul for lin1/lin2/lin3
    wo_blk = jnp.zeros((3 * out_ch, 3), F32)
    wo_blk = wo_blk.at[0:out_ch, 0].set(f(wo1)[:, 0])
    wo_blk = wo_blk.at[out_ch:2 * out_ch, 1].set(f(wo2)[:, 0])
    wo_blk = wo_blk.at[2 * out_ch:3 * out_ch, 2].set(f(wo3)[:, 0])
    bo = jnp.concatenate([f(bo1), f(bo2), f(bo3)]).reshape(1, 3)

    return dict(gcn_wb=gcn_wb, total_latent_dim=total_latent_dim,
                wc1=f(wc1), bc1=rb(bc1), wc2_km=wc2_km, bc2=rb(bc2),
                wl1_lc=wl1_lc, bl1=rb(bl1),
                wk1=f(wk1), bk1=rb(bk1), wk2=f(wk2), bk2=rb(bk2),
                wa1=f(wa1), ba1=rb(ba1), wa2=f(wa2), ba2=rb(ba2),
                wq=f(wq), bq=rb(bq), wo_blk=wo_blk, bo=bo,
                k=int(k), conv1_ch=int(C1), conv2_ch=int(C2), conv2_kw=int(KW),
                lp=int(Lp), lout=int(Lout))


# ----------------------------------------------------------------------------
# Forward pass
# ----------------------------------------------------------------------------

def bsal_forward(p, x, a_hat, knn_x, knn_a_hat, target_nodes, *,
                 num_graphs, nodes_per_graph):
    B, n_per = num_graphs, nodes_per_graph
    k = p["k"]
    D = p["total_latent_dim"]
    Lp = p["lp"]

    # ---- DGCNN branch: fused GCN stack (one pallas_call) ----
    xcat = dgcnn_gcn_stack(a_hat, x, p["gcn_wb"])              # [N, D]

    # sort-pool, then reorder rows parity-major so the in-kernel maxpool is a max of two
    # contiguous sublane slices: row = parity*(B*Lp) + b*Lp + p  <->  window 2p+parity of b
    sp = global_sort_pool(xcat, k, B, n_per)                   # [B, k, D]
    sp_re = (sp[:, :2 * Lp, :]
             .reshape(B, Lp, 2, D)
             .transpose(2, 0, 1, 3)
             .reshape(2 * B * Lp, D))

    # ---- knn-graph branch: fused 2-layer GCN + in-kernel gather / pair-sum (one call) ----
    emb_2 = knn_gcn_gather(target_nodes, knn_a_hat, knn_x,
                           p["wk1"], p["bk1"], p["wk2"], p["bk2"], num_pairs=B)

    # ---- fused head: conv1/pool/im2col/conv2/lin1 + attention fusion + outputs (one call) ----
    out = fused_head(sp_re, emb_2, p, num_graphs=B)            # [B, 3] lane-packed
    return out[:, 0:1], out[:, 1:2], out[:, 2:3]


# ----------------------------------------------------------------------------
# Main
# ----------------------------------------------------------------------------

if __name__ == "__main__":
    key = jax.random.PRNGKey(0)
    keys = jax.random.split(key, 24)

    # Small shapes consistent with the module
    B = 2                  # graphs in the batch
    n_per = 12             # nodes per subgraph
    in_ch = 4
    hidden = 8
    out_ch = 16
    num_layers = 2

    # DGCNN.__init__ k logic (k=0.6)
    num_nodes_sorted = sorted([n_per] * B)
    k = num_nodes_sorted[int(math.ceil(0.6 * len(num_nodes_sorted))) - 1]
    k = max(10, int(k))                                # -> 12
    total_latent_dim = hidden * num_layers + 1         # 17
    dense_dim = int((k - 2) / 2 + 1)                   # 6
    dense_dim = (dense_dim - 5 + 1) * 32               # 64

    # ---- synthetic `data` (batched subgraphs) ----
    total_nodes = B * n_per
    x = jax.random.normal(keys[0], (total_nodes, in_ch), F32)
    src, dst = [], []
    for g in range(B):
        off = g * n_per
        for i in range(n_per):
            j = (i + 1) % n_per
            src += [off + i, off + j]
            dst += [off + j, off + i]
    edge_index = jnp.array([src, dst], dtype=jnp.int32)
    a_hat = normalized_adj(edge_index, total_nodes)

    # ---- synthetic `knn_graph` ----
    M = 20
    kx = jax.random.normal(keys[1], (M, 32), F32)
    ksrc, kdst = [], []
    for i in range(M):
        j = (i + 1) % M
        ksrc += [i, j]
        kdst += [j, i]
    knn_edge_index = jnp.array([ksrc, kdst], dtype=jnp.int32)
    a_hat_knn = normalized_adj(knn_edge_index, M)
    target_nodes = jnp.array([0, 1, 10, 11], dtype=jnp.int32)   # two target nodes per graph

    # ---- deterministic parameters (torch layouts), then one-time packing/permutation ----
    wg0, bg0 = init_linear(keys[2], in_ch, hidden)
    wg1, bg1 = init_linear(keys[3], hidden, hidden)
    wg2, bg2 = init_linear(keys[4], hidden, 1)
    wc1, bc1 = init_linear(keys[5], total_latent_dim, 16)             # Conv1d(1,16,17,17)
    wc2 = 0.1 * jax.random.normal(keys[6], (32, 16, 5), F32)          # Conv1d(16,32,5,1) [O,I,K]
    bc2 = 0.1 * jax.random.normal(keys[7], (32,), F32)
    wl1, bl1 = init_linear(keys[8], dense_dim, out_ch)
    wk1, bk1 = init_linear(keys[9], 32, 64)                           # knn GCN 32 -> 64 -> out_ch
    wk2, bk2 = init_linear(keys[10], 64, out_ch)
    wa1, ba1 = init_linear(keys[11], out_ch, 16)
    wa2, ba2 = init_linear(keys[12], out_ch, 16)
    wq, bq = init_linear(keys[13], 16, 1)
    wo1, bo1 = init_linear(keys[14], out_ch, 1)
    wo2, bo2 = init_linear(keys[15], out_ch, 1)
    wo3, bo3 = init_linear(keys[16], out_ch, 1)

    prepped = prepare_params(
        wg=[wg0, wg1, wg2], bg=[bg0, bg1, bg2],
        wc1=wc1, bc1=bc1, wc2=wc2, bc2=bc2, wl1=wl1, bl1=bl1,
        wk1=wk1, bk1=bk1, wk2=wk2, bk2=bk2,
        wa1=wa1, ba1=ba1, wa2=wa2, ba2=ba2, wq=wq, bq=bq,
        wo1=wo1, bo1=bo1, wo2=wo2, bo2=bo2, wo3=wo3, bo3=bo3, k=k)

    fwd = jax.jit(functools.partial(bsal_forward, prepped,
                                    num_graphs=B, nodes_per_graph=n_per))
    out1, out2, out3 = fwd(x, a_hat, kx, a_hat_knn, target_nodes)
    jax.block_until_ready((out1, out2, out3))
    assert out1.shape == (B, 1) and out2.shape == (B, 1) and out3.shape == (B, 1)
    print("KERNEL_OK")
</pallas_src>

<mosaic_0001>
module attributes {stable_mosaic.version = 11 : i64} {
  func.func @_dgcnn_stack_kernel(%arg0: memref<24x24xf32, #tpu.memory_space<vmem>>, %arg1: memref<24x4xf32, #tpu.memory_space<vmem>>, %arg2: memref<4x8xf32, #tpu.memory_space<vmem>>, %arg3: memref<1x8xf32, #tpu.memory_space<vmem>>, %arg4: memref<8x8xf32, #tpu.memory_space<vmem>>, %arg5: memref<1x8xf32, #tpu.memory_space<vmem>>, %arg6: memref<8x1xf32, #tpu.memory_space<vmem>>, %arg7: memref<1x1xf32, #tpu.memory_space<vmem>>, %arg8: memref<24x17xf32, #tpu.memory_space<vmem>>) attributes {dimension_semantics = [], scalar_prefetch = 0 : i64, scratch_operands = 0 : i64, tpu.core_type = #tpu.core_type<tc>} {
    %c0 = arith.constant 0 : index
    %c0_0 = arith.constant 0 : index
    %0 = vector.load %arg0[%c0, %c0_0] : memref<24x24xf32, #tpu.memory_space<vmem>>, vector<24x24xf32>
    %c0_1 = arith.constant 0 : index
    %c0_2 = arith.constant 0 : index
    %1 = vector.load %arg1[%c0_1, %c0_2] : memref<24x4xf32, #tpu.memory_space<vmem>>, vector<24x4xf32>
    %c0_3 = arith.constant 0 : index
    %c0_4 = arith.constant 0 : index
    %2 = vector.load %arg2[%c0_3, %c0_4] : memref<4x8xf32, #tpu.memory_space<vmem>>, vector<4x8xf32>
    %cst = arith.constant dense<0.000000e+00> : vector<24x8xf32>
    %3 = tpu.matmul %1, %2, %cst {dimension_numbers = #tpu.dot_dimension_numbers<[1], [0], [0], [1], [0, 0, 1, 1], [], []>} : vector<24x4xf32>, vector<4x8xf32>, vector<24x8xf32> -> vector<24x8xf32>
    %cst_5 = arith.constant dense<0.000000e+00> : vector<24x8xf32>
    %4 = tpu.matmul %0, %3, %cst_5 {dimension_numbers = #tpu.dot_dimension_numbers<[1], [0], [0], [1], [0, 0, 1, 1], [], []>} : vector<24x24xf32>, vector<24x8xf32>, vector<24x8xf32> -> vector<24x8xf32>
    %c0_6 = arith.constant 0 : index
    %c0_7 = arith.constant 0 : index
    %5 = vector.load %arg3[%c0_6, %c0_7] : memref<1x8xf32, #tpu.memory_space<vmem>>, vector<1x8xf32>
    %6 = vector.broadcast %5 : vector<1x8xf32> to vector<24x8xf32>
    %7 = arith.addf %4, %6 : vector<24x8xf32>
    %8 = math.tanh %7 : vector<24x8xf32>
    %c0_8 = arith.constant 0 : index
    %c0_9 = arith.constant 0 : index
    %9 = vector.load %arg4[%c0_8, %c0_9] : memref<8x8xf32, #tpu.memory_space<vmem>>, vector<8x8xf32>
    %cst_10 = arith.constant dense<0.000000e+00> : vector<24x8xf32>
    %10 = tpu.matmul %8, %9, %cst_10 {dimension_numbers = #tpu.dot_dimension_numbers<[1], [0], [0], [1], [0, 0, 1, 1], [], []>} : vector<24x8xf32>, vector<8x8xf32>, vector<24x8xf32> -> vector<24x8xf32>
    %cst_11 = arith.constant dense<0.000000e+00> : vector<24x8xf32>
    %11 = tpu.matmul %0, %10, %cst_11 {dimension_numbers = #tpu.dot_dimension_numbers<[1], [0], [0], [1], [0, 0, 1, 1], [], []>} : vector<24x24xf32>, vector<24x8xf32>, vector<24x8xf32> -> vector<24x8xf32>
    %c0_12 = arith.constant 0 : index
    %c0_13 = arith.constant 0 : index
    %12 = vector.load %arg5[%c0_12, %c0_13] : memref<1x8xf32, #tpu.memory_space<vmem>>, vector<1x8xf32>
    %13 = vector.broadcast %12 : vector<1x8xf32> to vector<24x8xf32>
    %14 = arith.addf %11, %13 : vector<24x8xf32>
    %15 = math.tanh %14 : vector<24x8xf32>
    %c0_14 = arith.constant 0 : index
    %c0_15 = arith.constant 0 : index
    %16 = vector.load %arg6[%c0_14, %c0_15] : memref<8x1xf32, #tpu.memory_space<vmem>>, vector<8x1xf32>
    %cst_16 = arith.constant dense<0.000000e+00> : vector<24x1xf32>
    %17 = tpu.matmul %15, %16, %cst_16 {dimension_numbers = #tpu.dot_dimension_numbers<[1], [0], [0], [1], [0, 0, 1, 1], [], []>} : vector<24x8xf32>, vector<8x1xf32>, vector<24x1xf32> -> vector<24x1xf32>
    %cst_17 = arith.constant dense<0.000000e+00> : vector<24x1xf32>
    %18 = tpu.matmul %0, %17, %cst_17 {dimension_numbers = #tpu.dot_dimension_numbers<[1], [0], [0], [1], [0, 0, 1, 1], [], []>} : vector<24x24xf32>, vector<24x1xf32>, vector<24x1xf32> -> vector<24x1xf32>
    %c0_18 = arith.constant 0 : index
    %c0_19 = arith.constant 0 : index
    %19 = vector.load %arg7[%c0_18, %c0_19] : memref<1x1xf32, #tpu.memory_space<vmem>>, vector<1x1xf32>
    %20 = vector.broadcast %19 : vector<1x1xf32> to vector<24x1xf32>
    %21 = arith.addf %18, %20 : vector<24x1xf32>
    %22 = math.tanh %21 : vector<24x1xf32>
    %23 = tpu.concatenate %8, %15, %22 in 1 : vector<24x8xf32>, vector<24x8xf32>, vector<24x1xf32> -> vector<24x17xf32>
    %c0_20 = arith.constant 0 : index
    %c0_21 = arith.constant 0 : index
    %24 = vector.load %arg8[%c0_20, %c0_21] : memref<24x17xf32, #tpu.memory_space<vmem>>, vector<24x17xf32>
    tpu.vector_store %arg8[%c0_20, %c0_21], %23 {strides = array<i32>} : memref<24x17xf32, #tpu.memory_space<vmem>>, vector<24x17xf32>,
    return
  }
}

module attributes {stable_mosaic.version = 11 : i64} {
  func.func @_knn_gcn_gather_kernel(%arg0: memref<4xi32, #tpu.memory_space<smem>>, %arg1: memref<20x20xf32, #tpu.memory_space<vmem>>, %arg2: memref<20x32xf32, #tpu.memory_space<vmem>>, %arg3: memref<32x64xf32, #tpu.memory_space<vmem>>, %arg4: memref<1x64xf32, #tpu.memory_space<vmem>>, %arg5: memref<64x16xf32, #tpu.memory_space<vmem>>, %arg6: memref<1x16xf32, #tpu.memory_space<vmem>>, %arg7: memref<2x16xf32, #tpu.memory_space<vmem>>, %arg8: memref<20x16xf32, #tpu.memory_space<vmem>>) attributes {dimension_semantics = [], scalar_prefetch = 0 : i64, scratch_operands = 1 : i64, tpu.core_type = #tpu.core_type<tc>} {
    %c0 = arith.constant 0 : index
    %c0_0 = arith.constant 0 : index
    %0 = vector.load %arg1[%c0, %c0_0] : memref<20x20xf32, #tpu.memory_space<vmem>>, vector<20x20xf32>
    %c0_1 = arith.constant 0 : index
    %c0_2 = arith.constant 0 : index
    %1 = vector.load %arg2[%c0_1, %c0_2] : memref<20x32xf32, #tpu.memory_space<vmem>>, vector<20x32xf32>
    %c0_3 = arith.constant 0 : index
    %c0_4 = arith.constant 0 : index
    %2 = vector.load %arg3[%c0_3, %c0_4] : memref<32x64xf32, #tpu.memory_space<vmem>>, vector<32x64xf32>
    %cst = arith.constant dense<0.000000e+00> : vector<20x64xf32>
    %3 = tpu.matmul %1, %2, %cst {dimension_numbers = #tpu.dot_dimension_numbers<[1], [0], [0], [1], [0, 0, 1, 1], [], []>} : vector<20x32xf32>, vector<32x64xf32>, vector<20x64xf32> -> vector<20x64xf32>
    %cst_5 = arith.constant dense<0.000000e+00> : vector<20x64xf32>
    %4 = tpu.matmul %0, %3, %cst_5 {dimension_numbers = #tpu.dot_dimension_numbers<[1], [0], [0], [1], [0, 0, 1, 1], [], []>} : vector<20x20xf32>, vector<20x64xf32>, vector<20x64xf32> -> vector<20x64xf32>
    %c0_6 = arith.constant 0 : index
    %c0_7 = arith.constant 0 : index
    %5 = vector.load %arg4[%c0_6, %c0_7] : memref<1x64xf32, #tpu.memory_space<vmem>>, vector<1x64xf32>
    %6 = vector.broadcast %5 : vector<1x64xf32> to vector<20x64xf32>
    %7 = arith.addf %4, %6 : vector<20x64xf32>
    %cst_8 = arith.constant 0.000000e+00 : f32
    %8 = vector.broadcast %cst_8 : f32 to vector<20x64xf32>
    %9 = arith.maximumf %7, %8 : vector<20x64xf32>
    %c0_9 = arith.constant 0 : index
    %c0_10 = arith.constant 0 : index
    %10 = vector.load %arg5[%c0_9, %c0_10] : memref<64x16xf32, #tpu.memory_space<vmem>>, vector<64x16xf32>
    %cst_11 = arith.constant dense<0.000000e+00> : vector<20x16xf32>
    %11 = tpu.matmul %9, %10, %cst_11 {dimension_numbers = #tpu.dot_dimension_numbers<[1], [0], [0], [1], [0, 0, 1, 1], [], []>} : vector<20x64xf32>, vector<64x16xf32>, vector<20x16xf32> -> vector<20x16xf32>
    %cst_12 = arith.constant dense<0.000000e+00> : vector<20x16xf32>
    %12 = tpu.matmul %0, %11, %cst_12 {dimension_numbers = #tpu.dot_dimension_numbers<[1], [0], [0], [1], [0, 0, 1, 1], [], []>} : vector<20x20xf32>, vector<20x16xf32>, vector<20x16xf32> -> vector<20x16xf32>
    %c0_13 = arith.constant 0 : index
    %c0_14 = arith.constant 0 : index
    %13 = vector.load %arg6[%c0_13, %c0_14] : memref<1x16xf32, #tpu.memory_space<vmem>>, vector<1x16xf32>
    %14 = vector.broadcast %13 : vector<1x16xf32> to vector<20x16xf32>
    %15 = arith.addf %12, %14 : vector<20x16xf32>
    %c0_15 = arith.constant 0 : index
    %c0_16 = arith.constant 0 : index
    %16 = vector.load %arg8[%c0_15, %c0_16] : memref<20x16xf32, #tpu.memory_space<vmem>>, vector<20x16xf32>
    tpu.vector_store %arg8[%c0_15, %c0_16], %15 {strides = array<i32>} : memref<20x16xf32, #tpu.memory_space<vmem>>, vector<20x16xf32>,
    %c0_17 = arith.constant 0 : index
    %17 = memref.load %arg0[%c0_17] : memref<4xi32, #tpu.memory_space<smem>>
    %c1 = arith.constant 1 : index
    %18 = memref.load %arg0[%c1] : memref<4xi32, #tpu.memory_space<smem>>
    %19 = arith.index_cast %17 : i32 to index
    %c0_18 = arith.constant 0 : index
    %20 = vector.load %arg8[%19, %c0_18] : memref<20x16xf32, #tpu.memory_space<vmem>>, vector<1x16xf32>
    %21 = arith.index_cast %18 : i32 to index
    %c0_19 = arith.constant 0 : index
    %22 = vector.load %arg8[%21, %c0_19] : memref<20x16xf32, #tpu.memory_space<vmem>>, vector<1x16xf32>
    %23 = arith.addf %20, %22 : vector<1x16xf32>
    %c2 = arith.constant 2 : index
    %24 = memref.load %arg0[%c2] : memref<4xi32, #tpu.memory_space<smem>>
    %c3 = arith.constant 3 : index
    %25 = memref.load %arg0[%c3] : memref<4xi32, #tpu.memory_space<smem>>
    %26 = arith.index_cast %24 : i32 to index
    %c0_20 = arith.constant 0 : index
    %27 = vector.load %arg8[%26, %c0_20] : memref<20x16xf32, #tpu.memory_space<vmem>>, vector<1x16xf32>
    %28 = arith.index_cast %25 : i32 to index
    %c0_21 = arith.constant 0 : index
    %29 = vector.load %arg8[%28, %c0_21] : memref<20x16xf32, #tpu.memory_space<vmem>>, vector<1x16xf32>
    %30 = arith.addf %27, %29 : vector<1x16xf32>
    %31 = tpu.concatenate %23, %30 in 0 : vector<1x16xf32>, vector<1x16xf32> -> vector<2x16xf32>
    %c0_22 = arith.constant 0 : index
    %c0_23 = arith.constant 0 : index
    %32 = vector.load %arg7[%c0_22, %c0_23] : memref<2x16xf32, #tpu.memory_space<vmem>>, vector<2x16xf32>
    tpu.vector_store %arg7[%c0_22, %c0_23], %31 {strides = array<i32>} : memref<2x16xf32, #tpu.memory_space<vmem>>, vector<2x16xf32>,
    return
  }
}

module attributes {stable_mosaic.version = 11 : i64} {
  func.func @_fused_head_kernel(%arg0: memref<24x17xf32, #tpu.memory_space<vmem>>, %arg1: memref<2x16xf32, #tpu.memory_space<vmem>>, %arg2: memref<17x16xf32, #tpu.memory_space<vmem>>, %arg3: memref<1x16xf32, #tpu.memory_space<vmem>>, %arg4: memref<80x32xf32, #tpu.memory_space<vmem>>, %arg5: memref<1x32xf32, #tpu.memory_space<vmem>>, %arg6: memref<64x16xf32, #tpu.memory_space<vmem>>, %arg7: memref<1x16xf32, #tpu.memory_space<vmem>>, %arg8: memref<16x16xf32, #tpu.memory_space<vmem>>, %arg9: memref<1x16xf32, #tpu.memory_space<vmem>>, %arg10: memref<16x16xf32, #tpu.memory_space<vmem>>, %arg11: memref<1x16xf32, #tpu.memory_space<vmem>>, %arg12: memref<16x1xf32, #tpu.memory_space<vmem>>, %arg13: memref<1x1xf32, #tpu.memory_space<vmem>>, %arg14: memref<48x3xf32, #tpu.memory_space<vmem>>, %arg15: memref<1x3xf32, #tpu.memory_space<vmem>>, %arg16: memref<2x3xf32, #tpu.memory_space<vmem>>) attributes {dimension_semantics = [], scalar_prefetch = 0 : i64, scratch_operands = 0 : i64, tpu.core_type = #tpu.core_type<tc>} {
    %c0 = arith.constant 0 : index
    %c0_0 = arith.constant 0 : index
    %0 = vector.load %arg0[%c0, %c0_0] : memref<24x17xf32, #tpu.memory_space<vmem>>, vector<24x17xf32>
    %c0_1 = arith.constant 0 : index
    %c0_2 = arith.constant 0 : index
    %1 = vector.load %arg2[%c0_1, %c0_2] : memref<17x16xf32, #tpu.memory_space<vmem>>, vector<17x16xf32>
    %cst = arith.constant dense<0.000000e+00> : vector<24x16xf32>
    %2 = tpu.matmul %0, %1, %cst {dimension_numbers = #tpu.dot_dimension_numbers<[1], [0], [0], [1], [0, 0, 1, 1], [], []>} : vector<24x17xf32>, vector<17x16xf32>, vector<24x16xf32> -> vector<24x16xf32>
    %c0_3 = arith.constant 0 : index
    %c0_4 = arith.constant 0 : index
    %3 = vector.load %arg3[%c0_3, %c0_4] : memref<1x16xf32, #tpu.memory_space<vmem>>, vector<1x16xf32>
    %4 = vector.broadcast %3 : vector<1x16xf32> to vector<24x16xf32>
    %5 = arith.addf %2, %4 : vector<24x16xf32>
    %cst_5 = arith.constant 0.000000e+00 : f32
    %6 = vector.broadcast %cst_5 : f32 to vector<24x16xf32>
    %7 = arith.maximumf %5, %6 : vector<24x16xf32>
    %8 = vector.extract_strided_slice %7 {offsets = [0, 0], sizes = [12, 16], strides = [1, 1]} : vector<24x16xf32> to vector<12x16xf32>
    %9 = vector.extract_strided_slice %7 {offsets = [12, 0], sizes = [12, 16], strides = [1, 1]} : vector<24x16xf32> to vector<12x16xf32>
    %10 = arith.maximumf %8, %9 : vector<12x16xf32>
    %11 = vector.extract_strided_slice %10 {offsets = [0, 0], sizes = [2, 16], strides = [1, 1]} : vector<12x16xf32> to vector<2x16xf32>
    %12 = vector.extract_strided_slice %10 {offsets = [1, 0], sizes = [2, 16], strides = [1, 1]} : vector<12x16xf32> to vector<2x16xf32>
    %13 = vector.extract_strided_slice %10 {offsets = [2, 0], sizes = [2, 16], strides = [1, 1]} : vector<12x16xf32> to vector<2x16xf32>
    %14 = vector.extract_strided_slice %10 {offsets = [3, 0], sizes = [2, 16], strides = [1, 1]} : vector<12x16xf32> to vector<2x16xf32>
    %15 = vector.extract_strided_slice %10 {offsets = [4, 0], sizes = [2, 16], strides = [1, 1]} : vector<12x16xf32> to vector<2x16xf32>
    %16 = tpu.concatenate %11, %12, %13, %14, %15 in 1 : vector<2x16xf32>, vector<2x16xf32>, vector<2x16xf32>, vector<2x16xf32>, vector<2x16xf32> -> vector<2x80xf32>
    %17 = vector.extract_strided_slice %10 {offsets = [6, 0], sizes = [2, 16], strides = [1, 1]} : vector<12x16xf32> to vector<2x16xf32>
    %18 = vector.extract_strided_slice %10 {offsets = [7, 0], sizes = [2, 16], strides = [1, 1]} : vector<12x16xf32> to vector<2x16xf32>
    %19 = vector.extract_strided_slice %10 {offsets = [8, 0], sizes = [2, 16], strides = [1, 1]} : vector<12x16xf32> to vector<2x16xf32>
    %20 = vector.extract_strided_slice %10 {offsets = [9, 0], sizes = [2, 16], strides = [1, 1]} : vector<12x16xf32> to vector<2x16xf32>
    %21 = vector.extract_strided_slice %10 {offsets = [10, 0], sizes = [2, 16], strides = [1, 1]} : vector<12x16xf32> to vector<2x16xf32>
    %22 = tpu.concatenate %17, %18, %19, %20, %21 in 1 : vector<2x16xf32>, vector<2x16xf32>, vector<2x16xf32>, vector<2x16xf32>, vector<2x16xf32> -> vector<2x80xf32>
    %23 = tpu.concatenate %16, %22 in 0 : vector<2x80xf32>, vector<2x80xf32> -> vector<4x80xf32>
    %c0_6 = arith.constant 0 : index
    %c0_7 = arith.constant 0 : index
    %24 = vector.load %arg4[%c0_6, %c0_7] : memref<80x32xf32, #tpu.memory_space<vmem>>, vector<80x32xf32>
    %cst_8 = arith.constant dense<0.000000e+00> : vector<4x32xf32>
    %25 = tpu.matmul %23, %24, %cst_8 {dimension_numbers = #tpu.dot_dimension_numbers<[1], [0], [0], [1], [0, 0, 1, 1], [], []>} : vector<4x80xf32>, vector<80x32xf32>, vector<4x32xf32> -> vector<4x32xf32>
    %c0_9 = arith.constant 0 : index
    %c0_10 = arith.constant 0 : index
    %26 = vector.load %arg5[%c0_9, %c0_10] : memref<1x32xf32, #tpu.memory_space<vmem>>, vector<1x32xf32>
    %27 = vector.broadcast %26 : vector<1x32xf32> to vector<4x32xf32>
    %28 = arith.addf %25, %27 : vector<4x32xf32>
    %cst_11 = arith.constant 0.000000e+00 : f32
    %29 = vector.broadcast %cst_11 : f32 to vector<4x32xf32>
    %30 = arith.maximumf %28, %29 : vector<4x32xf32>
    %31 = vector.extract_strided_slice %30 {offsets = [0, 0], sizes = [1, 32], strides = [1, 1]} : vector<4x32xf32> to vector<1x32xf32>
    %32 = vector.extract_strided_slice %30 {offsets = [1, 0], sizes = [1, 32], strides = [1, 1]} : vector<4x32xf32> to vector<1x32xf32>
    %33 = tpu.concatenate %31, %32 in 1 : vector<1x32xf32>, vector<1x32xf32> -> vector<1x64xf32>
    %34 = vector.extract_strided_slice %30 {offsets = [2, 0], sizes = [1, 32], strides = [1, 1]} : vector<4x32xf32> to vector<1x32xf32>
    %35 = vector.extract_strided_slice %30 {offsets = [3, 0], sizes = [1, 32], strides = [1, 1]} : vector<4x32xf32> to vector<1x32xf32>
    %36 = tpu.concatenate %34, %35 in 1 : vector<1x32xf32>, vector<1x32xf32> -> vector<1x64xf32>
    %37 = tpu.concatenate %33, %36 in 0 : vector<1x64xf32>, vector<1x64xf32> -> vector<2x64xf32>
    %c0_12 = arith.constant 0 : index
    %c0_13 = arith.constant 0 : index
    %38 = vector.load %arg6[%c0_12, %c0_13] : memref<64x16xf32, #tpu.memory_space<vmem>>, vector<64x16xf32>
    %cst_14 = arith.constant dense<0.000000e+00> : vector<2x16xf32>
    %39 = tpu.matmul %37, %38, %cst_14 {dimension_numbers = #tpu.dot_dimension_numbers<[1], [0], [0], [1], [0, 0, 1, 1], [], []>} : vector<2x64xf32>, vector<64x16xf32>, vector<2x16xf32> -> vector<2x16xf32>
    %c0_15 = arith.constant 0 : index
    %c0_16 = arith.constant 0 : index
    %40 = vector.load %arg7[%c0_15, %c0_16] : memref<1x16xf32, #tpu.memory_space<vmem>>, vector<1x16xf32>
    %41 = vector.broadcast %40 : vector<1x16xf32> to vector<2x16xf32>
    %42 = arith.addf %39, %41 : vector<2x16xf32>
    %c0_17 = arith.constant 0 : index
    %c0_18 = arith.constant 0 : index
    %43 = vector.load %arg1[%c0_17, %c0_18] : memref<2x16xf32, #tpu.memory_space<vmem>>, vector<2x16xf32>
    %c0_19 = arith.constant 0 : index
    %c0_20 = arith.constant 0 : index
    %44 = vector.load %arg8[%c0_19, %c0_20] : memref<16x16xf32, #tpu.memory_space<vmem>>, vector<16x16xf32>
    %cst_21 = arith.constant dense<0.000000e+00> : vector<2x16xf32>
    %45 = tpu.matmul %42, %44, %cst_21 {dimension_numbers = #tpu.dot_dimension_numbers<[1], [0], [0], [1], [0, 0, 1, 1], [], []>} : vector<2x16xf32>, vector<16x16xf32>, vector<2x16xf32> -> vector<2x16xf32>
    %c0_22 = arith.constant 0 : index
    %c0_23 = arith.constant 0 : index
    %46 = vector.load %arg9[%c0_22, %c0_23] : memref<1x16xf32, #tpu.memory_space<vmem>>, vector<1x16xf32>
    %47 = vector.broadcast %46 : vector<1x16xf32> to vector<2x16xf32>
    %48 = arith.addf %45, %47 : vector<2x16xf32>
    %49 = math.tanh %48 : vector<2x16xf32>
    %c0_24 = arith.constant 0 : index
    %c0_25 = arith.constant 0 : index
    %50 = vector.load %arg10[%c0_24, %c0_25] : memref<16x16xf32, #tpu.memory_space<vmem>>, vector<16x16xf32>
    %cst_26 = arith.constant dense<0.000000e+00> : vector<2x16xf32>
    %51 = tpu.matmul %43, %50, %cst_26 {dimension_numbers = #tpu.dot_dimension_numbers<[1], [0], [0], [1], [0, 0, 1, 1], [], []>} : vector<2x16xf32>, vector<16x16xf32>, vector<2x16xf32> -> vector<2x16xf32>
    %c0_27 = arith.constant 0 : index
    %c0_28 = arith.constant 0 : index
    %52 = vector.load %arg11[%c0_27, %c0_28] : memref<1x16xf32, #tpu.memory_space<vmem>>, vector<1x16xf32>
    %53 = vector.broadcast %52 : vector<1x16xf32> to vector<2x16xf32>
    %54 = arith.addf %51, %53 : vector<2x16xf32>
    %55 = math.tanh %54 : vector<2x16xf32>
    %c0_29 = arith.constant 0 : index
    %c0_30 = arith.constant 0 : index
    %56 = vector.load %arg12[%c0_29, %c0_30] : memref<16x1xf32, #tpu.memory_space<vmem>>, vector<16x1xf32>
    %cst_31 = arith.constant dense<0.000000e+00> : vector<2x1xf32>
    %57 = tpu.matmul %49, %56, %cst_31 {dimension_numbers = #tpu.dot_dimension_numbers<[1], [0], [0], [1], [0, 0, 1, 1], [], []>} : vector<2x16xf32>, vector<16x1xf32>, vector<2x1xf32> -> vector<2x1xf32>
    %c0_32 = arith.constant 0 : index
    %c0_33 = arith.constant 0 : index
    %58 = vector.load %arg13[%c0_32, %c0_33] : memref<1x1xf32, #tpu.memory_space<vmem>>, vector<1x1xf32>
    %59 = vector.broadcast %58 : vector<1x1xf32> to vector<2x1xf32>
    %60 = arith.addf %57, %59 : vector<2x1xf32>
    %c0_34 = arith.constant 0 : index
    %c0_35 = arith.constant 0 : index
    %61 = vector.load %arg12[%c0_34, %c0_35] : memref<16x1xf32, #tpu.memory_space<vmem>>, vector<16x1xf32>
    %cst_36 = arith.constant dense<0.000000e+00> : vector<2x1xf32>
    %62 = tpu.matmul %55, %61, %cst_36 {dimension_numbers = #tpu.dot_dimension_numbers<[1], [0], [0], [1], [0, 0, 1, 1], [], []>} : vector<2x16xf32>, vector<16x1xf32>, vector<2x1xf32> -> vector<2x1xf32>
    %c0_37 = arith.constant 0 : index
    %c0_38 = arith.constant 0 : index
    %63 = vector.load %arg13[%c0_37, %c0_38] : memref<1x1xf32, #tpu.memory_space<vmem>>, vector<1x1xf32>
    %64 = vector.broadcast %63 : vector<1x1xf32> to vector<2x1xf32>
    %65 = arith.addf %62, %64 : vector<2x1xf32>
    %66 = arith.maximumf %60, %65 : vector<2x1xf32>
    %67 = arith.subf %60, %66 : vector<2x1xf32>
    %68 = math.exp %67 : vector<2x1xf32>
    %69 = arith.subf %65, %66 : vector<2x1xf32>
    %70 = math.exp %69 : vector<2x1xf32>
    %71 = arith.addf %68, %70 : vector<2x1xf32>
    %cst_39 = arith.constant 1.000000e+00 : f32
    %72 = vector.broadcast %cst_39 : f32 to vector<2x1xf32>
    %73 = arith.divf %72, %71 : vector<2x1xf32>
    %74 = arith.mulf %68, %73 : vector<2x1xf32>
    %75 = arith.mulf %70, %73 : vector<2x1xf32>
    %76 = vector.broadcast %74 : vector<2x1xf32> to vector<2x16xf32>
    %77 = arith.mulf %76, %42 : vector<2x16xf32>
    %78 = vector.broadcast %75 : vector<2x1xf32> to vector<2x16xf32>
    %79 = arith.mulf %78, %43 : vector<2x16xf32>
    %80 = arith.addf %77, %79 : vector<2x16xf32>
    %81 = tpu.concatenate %42, %43, %80 in 1 : vector<2x16xf32>, vector<2x16xf32>, vector<2x16xf32> -> vector<2x48xf32>
    %c0_40 = arith.constant 0 : index
    %c0_41 = arith.constant 0 : index
    %82 = vector.load %arg14[%c0_40, %c0_41] : memref<48x3xf32, #tpu.memory_space<vmem>>, vector<48x3xf32>
    %cst_42 = arith.constant dense<0.000000e+00> : vector<2x3xf32>
    %83 = tpu.matmul %81, %82, %cst_42 {dimension_numbers = #tpu.dot_dimension_numbers<[1], [0], [0], [1], [0, 0, 1, 1], [], []>} : vector<2x48xf32>, vector<48x3xf32>, vector<2x3xf32> -> vector<2x3xf32>
    %c0_43 = arith.constant 0 : index
    %c0_44 = arith.constant 0 : index
    %84 = vector.load %arg15[%c0_43, %c0_44] : memref<1x3xf32, #tpu.memory_space<vmem>>, vector<1x3xf32>
    %85 = vector.broadcast %84 : vector<1x3xf32> to vector<2x3xf32>
    %86 = arith.addf %83, %85 : vector<2x3xf32>
    %c0_45 = arith.constant 0 : index
    %c0_46 = arith.constant 0 : index
    %87 = vector.load %arg16[%c0_45, %c0_46] : memref<2x3xf32, #tpu.memory_space<vmem>>, vector<2x3xf32>
    tpu.vector_store %arg16[%c0_45, %c0_46], %86 {strides = array<i32>} : memref<2x3xf32, #tpu.memory_space<vmem>>, vector<2x3xf32>,
    return
  }
}

</mosaic_0001>

<bundles_post_ra>
// kernel: bsal_forward.3
= control target key start
LH: loop header
LB: loop body
LE: loop exit
PB: predicated region body
PF: predicated region fallthrough
CT: control target
= control target key end

     0   :  { %vm48_vm0 = vcmask 1043456   ;;  %vm38_vm1 = vcmask 31744   ;;  %v791_v0 = vmov 0.0   ;;  %vm792_vm2 = vmmov 0   ;;  %s794_s22 = smov 8   ;;  %s979_s2 = inlined_call_operand.vmem [shape: f32[4,8], index: 2, kind: input, shape index: {}]   ;;  %s980_s1 = inlined_call_operand.vmem [shape: f32[24,4], index: 1, kind: input, shape index: {}]   ;;  %s981_s0 = inlined_call_operand.vmem [shape: f32[24,24], index: 0, kind: input, shape index: {}]   ;;  %s982_s4 = inlined_call_operand.vmem [shape: f32[8,8], index: 4, kind: input, shape index: {}]   ;;  %s983_s3 = inlined_call_operand.vmem [shape: f32[1,8], index: 3, kind: input, shape index: {}]   ;;  %s984_s6 = inlined_call_operand.vmem [shape: f32[8,1], index: 6, kind: input, shape index: {}]   ;;  %s985_s5 = inlined_call_operand.vmem [shape: f32[1,8], index: 5, kind: input, shape index: {}]   ;;  %s986_s7 = inlined_call_operand.<no memory space> [shape: f32[1,1], index: 7, kind: input, shape index: {}]   ;;  %s987_s8 = inlined_call_operand.vmem [shape: f32[24,17], index: 8, kind: output, shape index: {}]  }
   0x1   :  { %681 = vmatprep.subr.mxu0 %v791_v0  ;;  %v37_v1 = vld [vmem:[%s979_s2] sm:$0xf]  ;;  %683 = vmatprep.mubr.msk.f32.mxu0 %vm792_vm2, %v791_v0  ;;  %v35_v3 = vld [vmem:[%s980_s1 + $0x8] sm:$0xff]  ;;  %v36_v4 = vld [vmem:[%s980_s1 + $0x10] sm:$0xff]  ;;  %v793_v5 = vmov 0.0|0.0   ;;  %vm139_vm3 = vcmask 195584   ;;  %v13_v51 = vstv %s986_s7 }
   0x2   :  { %v34_v2 = vld [vmem:[%s980_s1] sm:$0xff]  ;;  %682 = vmatpush3.msk.msra.mxu0 %vm48_vm0, %v37_v1  ;;  %698 = vmatprep.mubr.msk.f32.mxu1 %vm792_vm2, %v791_v0  ;;  %v883_v14 = vld [vmem:[%s981_s0 + $0x8] sm:$0xff]  ;;  %v892_v15 = vld [vmem:[%s981_s0 + $0x10] sm:$0xff]  ;;  %vm233_vm4 = vcmask 64512   ;;  %14 = vst [vmem:[#allocation2] sm:$0x1] %v13_v51 }
   0x3   :  { %684 = vmatmul.mubr.msk.f32.vlgmr.msra.gmra.mrb[0].mxu0 %vm38_vm1, %v34_v2  ;;  %707 = vmatprep.subr.mxu0 %v791_v0  ;;  %v873_v13 = vld [vmem:[%s981_s0] sm:$0xff]  ;;  %s795_s7 = smov 16   ;;  %vm617_vm5 = vcmask 130048   ;;  %vm621_vm6 = vcmask 138240  }
   0x4   :  { %686 = vmatprep.mubr.msk.f32.mxu0 %vm792_vm2, %v791_v0  ;;  %759 = vmatprep.subr.bf16.mxu1 %v793_v5  ;;  %v232_v16 = vld [vmem:[%s982_s4] sm:$0xff] }
   0x5   :  { %708 = vmatpush3.msra.mxu0 %v232_v16  ;;  %v633_v17 = vld [vmem:[%s983_s3] ss:$0 sm:$0xff] }
   0x6   :  { %733 = vmatprep.subr.mxu0 %v791_v0  ;;  %v413_v37 = vld [vmem:[%s984_s6] sm:$0xff] }
   0x7   :  { %687 = vmatmul.mubr.msk.f32.gmra.mrb[2].mxu0 %vm38_vm1, %v35_v3  ;;  %v640_v38 = vld [vmem:[%s985_s5] ss:$0 sm:$0xff] }
   0x8   :  { %689 = vmatprep.mubr.msk.f32.mxu0 %vm792_vm2, %v791_v0 }
   0x9   :  { %v647_v59 = vld [vmem:[#allocation2] ss:$0 sm:$0xff] }
   0xb   :  { %690 = vmatmul.mubr.msk.f32.gmra.mrb[4].mxu0 %vm38_vm1, %v36_v4 }
   0xc   :  { %709 = vmatprep.mubr.msk.f32.mxu0 %vm792_vm2, %v791_v0 }
  0xd6   :  { %v118_v6 = vpop.f32.mrb[0].mxu0 }
  0xd7   :  { %v685_v7 = vpop.f32.mrb[1].mxu0 }
  0xda   :  { %v123_v8 = vpop.f32.mrb[2].mxu0 }
  0xdb   :  { %v760_v9 = vpack.c.bf16 %v123_v8, %v118_v6  ;;  %v688_v10 = vpop.f32.mrb[3].mxu0 }
  0xdd   :  { %761 = vmatpush3.bf16.msra.mxu1 %v760_v9 }
  0xde   :  { %v128_v11 = vpop.f32.mrb[4].mxu0  ;;  %696 = vmatprep.subr.mxu1 %v791_v0 }
  0xdf   :  { %v691_v12 = vpop.f32.mrb[5].mxu0 }
  0xe1   :  { %697 = vmatpush3.msra.mxu1 %v128_v11 }
  0xe2   :  { %699 = vmatmul.mubr.msk.f32.vlgmr.msra.gmra.mrb[0].mxu1 %vm139_vm3, %v873_v13  ;;  %762 = vmatprep.subr.bf16.mxu1 %v793_v5 }
  0xe3   :  { %701 = vmatprep.mubr.msk.f32.mxu1 %vm792_vm2, %v791_v0 }
  0xe6   :  { %702 = vmatmul.mubr.msk.f32.gmra.mrb[2].mxu1 %vm139_vm3, %v883_v14 }
  0xe7   :  { %704 = vmatprep.mubr.msk.f32.mxu1 %vm792_vm2, %v791_v0 }
  0xea   :  { %705 = vmatmul.mubr.msk.f32.gmra.mrb[4].mxu1 %vm139_vm3, %v892_v15 }
  0xeb   :  { %724 = vmatprep.mubr.msk.f32.mxu1 %vm792_vm2, %v791_v0 }
 0x1b5   :  { %v215_v18 = vpop.f32.mrb[0].mxu1 }
 0x1b6   :  { %v216_v19 = vadd.f32 %v633_v17, %v215_v18  ;;  %v700_v20 = vpop.f32.mrb[1].mxu1 }
 0x1b8   :  { %773 = vtanh.f32 %v216_v19 }
 0x1b9   :  { %v220_v21 = vpop.f32.mrb[2].mxu1 }
 0x1ba   :  { %v221_v22 = vadd.f32 %v633_v17, %v220_v21  ;;  %v703_v23 = vpop.f32.mrb[3].mxu1 }
 0x1bc   :  { %775 = vtanh.f32 %v221_v22 }
 0x1bd   :  { %v225_v24 = vpop.f32.mrb[4].mxu1 }
 0x1be   :  { %v226_v25 = vadd.f32 %v633_v17, %v225_v24  ;;  %v706_v26 = vpop.f32.mrb[5].mxu1 }
 0x1c0   :  { %777 = vtanh.f32 %v226_v25 }
 0x1c2   :  { %v905_v27 = vpop.eup %773 }
 0x1c3   :  { %710 = vmatmul.mubr.msk.f32.vlgmr.msra.gmra.mrb[6].mxu0 %vm233_vm4, %v905_v27 }
 0x1c4   :  { %712 = vmatprep.mubr.msk.f32.mxu0 %vm792_vm2, %v791_v0  ;;  %734 = vmatpush3.msra.mxu0 %v413_v37 }
 0x1c6   :  { %v911_v28 = vpop.eup %775 }
 0x1c7   :  { %713 = vmatmul.mubr.msk.f32.gmra.mrb[8].mxu0 %vm233_vm4, %v911_v28 }
 0x1c8   :  { %715 = vmatprep.mubr.msk.f32.mxu0 %vm792_vm2, %v791_v0 }
 0x1ca   :  { %v917_v29 = vpop.eup %777 }
 0x1cb   :  { %716 = vmatmul.mubr.msk.f32.gmra.mrb[10].mxu0 %vm233_vm4, %v917_v29 }
 0x1cc   :  { %735 = vmatprep.mubr.msk.f32.mxu0 %vm792_vm2, %v791_v0 }
 0x296   :  { %v309_v30 = vpop.f32.mrb[6].mxu0 }
 0x297   :  { %v711_v31 = vpop.f32.mrb[7].mxu0 }
 0x29a   :  { %v314_v32 = vpop.f32.mrb[8].mxu0 }
 0x29b   :  { %v763_v33 = vpack.c.bf16 %v314_v32, %v309_v30  ;;  %v714_v34 = vpop.f32.mrb[9].mxu0 }
 0x29d   :  { %764 = vmatpush3.bf16.msra.mxu1 %v763_v33 }
 0x29e   :  { %v319_v35 = vpop.f32.mrb[10].mxu0  ;;  %722 = vmatprep.subr.mxu1 %v791_v0 }
 0x29f   :  { %v717_v36 = vpop.f32.mrb[11].mxu0 }
 0x2a1   :  { %723 = vmatpush3.msra.mxu1 %v319_v35 }
 0x2a2   :  { %725 = vmatmul.mubr.msk.f32.vlgmr.msra.gmra.mrb[6].mxu1 %vm139_vm3, %v873_v13  ;;  %765 = vmatprep.subr.bf16.mxu1 %v793_v5 }
 0x2a3   :  { %727 = vmatprep.mubr.msk.f32.mxu1 %vm792_vm2, %v791_v0 }
 0x2a6   :  { %728 = vmatmul.mubr.msk.f32.gmra.mrb[8].mxu1 %vm139_vm3, %v883_v14 }
 0x2a7   :  { %730 = vmatprep.mubr.msk.f32.mxu1 %vm792_vm2, %v791_v0 }
 0x2aa   :  { %731 = vmatmul.mubr.msk.f32.gmra.mrb[10].mxu1 %vm139_vm3, %v892_v15 }
 0x2ab   :  { %750 = vmatprep.mubr.msk.f32.mxu1 %vm792_vm2, %v791_v0 }
 0x375   :  { %v396_v39 = vpop.f32.mrb[6].mxu1 }
 0x376   :  { %v397_v40 = vadd.f32 %v640_v38, %v396_v39  ;;  %v726_v41 = vpop.f32.mrb[7].mxu1 }
 0x378   :  { %779 = vtanh.f32 %v397_v40 }
 0x379   :  { %v401_v42 = vpop.f32.mrb[8].mxu1 }
 0x37a   :  { %v402_v43 = vadd.f32 %v640_v38, %v401_v42  ;;  %v729_v44 = vpop.f32.mrb[9].mxu1 }
 0x37c   :  { %781 = vtanh.f32 %v402_v43 }
 0x37d   :  { %v406_v45 = vpop.f32.mrb[10].mxu1 }
 0x37e   :  { %v407_v46 = vadd.f32 %v640_v38, %v406_v45  ;;  %v732_v47 = vpop.f32.mrb[11].mxu1 }
 0x380   :  { %783 = vtanh.f32 %v407_v46 }
 0x382   :  { %v780_v48 = vpop.eup %779 }
 0x383   :  { %593 = vrot.lane.b32.xlu0 %v780_v48, %s794_s22  ;;  %736 = vmatmul.mubr.msk.f32.vlgmr.msra.gmra.mrb[12].mxu0 %vm233_vm4, %v780_v48 }
 0x384   :  { %738 = vmatprep.mubr.msk.f32.mxu0 %vm792_vm2, %v791_v0 }
 0x386   :  { %v782_v49 = vpop.eup %781 }
 0x387   :  { %595 = vrot.lane.b32.xlu0 %v782_v49, %s794_s22  ;;  %739 = vmatmul.mubr.msk.f32.gmra.mrb[14].mxu0 %vm233_vm4, %v782_v49 }
 0x388   :  { %741 = vmatprep.mubr.msk.f32.mxu0 %vm792_vm2, %v791_v0 }
 0x38a   :  { %v784_v50 = vpop.eup %783 }
 0x38b   :  { %597 = vrot.lane.b32.xlu1 %v784_v50, %s794_s22  ;;  %742 = vmatmul.mubr.msk.f32.gmra.mrb[16].mxu0 %vm233_vm4, %v784_v50 }
 0x3f5   :  { %v594_v8 = vpop.permute.xlu0 %593 }
 0x3f6   :  { %v614_v10 = vsel %vm233_vm4, %v905_v27, %v594_v8 }
 0x3f9   :  { %v596_v11 = vpop.permute.xlu0 %595 }
 0x3fd   :  { %v598_v9 = vpop.permute.xlu1 %597 }
 0x3fe   :  { %v616_v17 = vsel %vm233_vm4, %v917_v29, %v598_v9 }
 0x456   :  { %v489_v52 = vpop.f32.mrb[12].mxu0 }
 0x457   :  { %v737_v53 = vpop.f32.mrb[13].mxu0 }
 0x45a   :  { %v494_v54 = vpop.f32.mrb[14].mxu0 }
 0x45b   :  { %v766_v55 = vpack.c.bf16 %v494_v54, %v489_v52  ;;  %v740_v56 = vpop.f32.mrb[15].mxu0 }
 0x45d   :  { %767 = vmatpush3.bf16.msra.mxu1 %v766_v55 }
 0x45e   :  { %v499_v57 = vpop.f32.mrb[16].mxu0  ;;  %748 = vmatprep.subr.mxu1 %v791_v0 }
 0x45f   :  { %v743_v58 = vpop.f32.mrb[17].mxu0 }
 0x461   :  { %749 = vmatpush3.msra.mxu1 %v499_v57 }
 0x462   :  { %751 = vmatmul.mubr.msk.f32.vlgmr.msra.gmra.mrb[12].mxu1 %vm139_vm3, %v873_v13 }
 0x463   :  { %753 = vmatprep.mubr.msk.f32.mxu1 %vm792_vm2, %v791_v0 }
 0x466   :  { %754 = vmatmul.mubr.msk.f32.gmra.mrb[14].mxu1 %vm139_vm3, %v883_v14  ;;  %v615_v14 = vsel %vm233_vm4, %v911_v28, %v596_v11 }
 0x467   :  { %756 = vmatprep.mubr.msk.f32.mxu1 %vm792_vm2, %v791_v0 }
 0x46a   :  { %757 = vmatmul.mubr.msk.f32.gmra.mrb[16].mxu1 %vm139_vm3, %v892_v15 }
 0x535   :  { %v576_v60 = vpop.f32.mrb[12].mxu1 }
 0x536   :  { %v577_v61 = vadd.f32 %v647_v59, %v576_v60  ;;  %v752_v62 = vpop.f32.mrb[13].mxu1 }
 0x538   :  { %785 = vtanh.f32 %v577_v61 }
 0x539   :  { %v581_v63 = vpop.f32.mrb[14].mxu1 }
 0x53a   :  { %v582_v1 = vadd.f32 %v647_v59, %v581_v63  ;;  %v755_v2 = vpop.f32.mrb[15].mxu1 }
 0x53c   :  { %787 = vtanh.f32 %v582_v1 }
 0x53d   :  { %v586_v3 = vpop.f32.mrb[16].mxu1 }
 0x53e   :  { %v587_v4 = vadd.f32 %v647_v59, %v586_v3  ;;  %v758_v5 = vpop.f32.mrb[17].mxu1 }
 0x540   :  { %789 = vtanh.f32 %v587_v4 }
 0x542   :  { %v786_v6 = vpop.eup %785 }
 0x543   :  { %605 = vrot.lane.b32.xlu1 %v786_v6, %s795_s7 }
 0x546   :  { %v788_v0 = vpop.eup %787 }
 0x547   :  { %607 = vrot.lane.b32.xlu0 %v788_v0, %s795_s7 }
 0x54a   :  { %v790_v7 = vpop.eup %789 }
 0x54b   :  { %609 = vrot.lane.b32.xlu1 %v790_v7, %s795_s7 }
 0x5b5   :  { %v606_v12 = vpop.permute.xlu1 %605 }
 0x5b6   :  { %v618_v13 = vsel %vm617_vm5, %v614_v10, %v606_v12 }
 0x5b7   :  { %622 = vst.msk [vmem:[%s987_s8] sm:$0xff] %vm621_vm6, %v618_v13 }
 0x5b9   :  { %v608_v15 = vpop.permute.xlu0 %607 }
 0x5ba   :  { %v619_v16 = vsel %vm617_vm5, %v615_v14, %v608_v15 }
 0x5bb   :  { %623 = vst.msk [vmem:[%s987_s8 + $0x8] sm:$0xff] %vm621_vm6, %v619_v16 }
 0x5bd   :  { %v610_v18 = vpop.permute.xlu1 %609 }
 0x5be   :  { %v620_v19 = vsel %vm617_vm5, %v616_v17, %v610_v18 }
 0x5bf   :  { %624 = vst.msk [vmem:[%s987_s8 + $0x10] sm:$0xff] %vm621_vm6, %v620_v19 }

// kernel: bsal_forward.4
= control target key start
LH: loop header
LB: loop body
LE: loop exit
PB: predicated region body
PF: predicated region fallthrough
CT: control target
= control target key end

     0   :  { %12 = vsyncpa [#allocation4], 0  ;;  %s773_s0 = inlined_call_operand.vmem [shape: s32[4], index: 0, kind: input, shape index: {}]   ;;  %s774_s1 = inlined_call_operand.vmem [shape: f32[20,20], index: 1, kind: input, shape index: {}]   ;;  %s775_s2 = inlined_call_operand.vmem [shape: f32[20,32], index: 2, kind: input, shape index: {}]   ;;  %s776_s3 = inlined_call_operand.vmem [shape: f32[32,64], index: 3, kind: input, shape index: {}]   ;;  %s777_s4 = inlined_call_operand.vmem [shape: f32[1,64], index: 4, kind: input, shape index: {}]   ;;  %s778_s5 = inlined_call_operand.vmem [shape: f32[64,16], index: 5, kind: input, shape index: {}]   ;;  %s779_s6 = inlined_call_operand.vmem [shape: f32[1,16], index: 6, kind: input, shape index: {}]   ;;  %s780_s7 = inlined_call_operand.vmem [shape: f32[2,16], index: 7, kind: output, shape index: {}]  }
   0x1   :  { %s19_s26 = sshll.u32 %s773_s0, 4  ;;  %s20_s26 = int_to_ptr.vmem [resolvable:$true] %s19_s26 }
   0x2   :  { %s615_s27 = scalar_lea.vmem %s20_s26, 16  ;;  %p620_p1 = scmp.lt.s32.totalorder %s20_s26, %s20_s26 }
   0x3   :  { %p616_p0 = scmp.ne.s32.totalorder %s20_s26, %s615_s27  ;;  %p621_p2 = scmp.lt.s32.totalorder %s615_s27, %s615_s27 }
   0x5   :  { %p622_p3 = por %p621_p2, %p620_p1 }
   0x7   :  { %p623_p4 = pnand %p622_p3, %p616_p0 }
   0x9   :  { %626 = shalt.err (!%p623_p4)
}
   0xa   :  { %s629_s28 = smov [#allocation3]  }
   0xb   :  { %22 = dma.vmem_to_smem %s20_s26, 16, %s629_s28, [#allocation4]  }
   0xc   :  { %627 = dma.done.wait [#allocation4], 16  }
   0xd   :  { %628 = vsyncadd [#allocation4], 4294967280 }
   0xe   :  { %38 = sfence }
   0xf   :  { %v45_v0 = vld [vmem:[%s776_s3] sm:$0xff]  ;;  %v46_v1 = vld [vmem:[%s776_s3 + $0x8] sm:$0xff]  ;;  %v47_v2 = vld [vmem:[%s776_s3 + $0x10] sm:$0xff]  ;;  %v630_v3 = vmov 0.0|0.0   ;;  %vm631_vm0 = vmmov 0   ;;  %v632_v6 = vmov 0.0  }
  0x10   :  { %587 = vmatprep.subr.bf16.mxu0 %v630_v3  ;;  %v588_v4 = vpack.c.bf16 %v46_v1, %v45_v0  ;;  %v48_v5 = vld [vmem:[%s776_s3 + $0x18] sm:$0xff]  ;;  %523 = vmatprep.mubr.msk.f32.mxu0 %vm631_vm0, %v632_v6  ;;  %v42_v8 = vld [vmem:[%s775_s2] sm:$0xff]  ;;  %vm49_vm1 = vcmask 261120   ;;  %v43_v9 = vld [vmem:[%s775_s2 + $0x8] sm:$0xff]  ;;  %vm156_vm2 = vcmask 1043456   ;;  %vm146_vm3 = vcmask 162816  }
  0x11   :  { %593 = vmatprep.subr.bf16.mxu1 %v630_v3  ;;  %538 = vmatprep.mubr.msk.f32.mxu1 %vm631_vm0, %v632_v6  ;;  %v591_v7 = vpack.c.bf16 %v48_v5, %v47_v2  ;;  %v44_v10 = vld [vmem:[%s775_s2 + $0x10] sm:$0xf]  ;;  %v243_v16 = vld [vmem:[%s778_s5] sm:$0xff]  ;;  %v244_v17 = vld [vmem:[%s778_s5 + $0x8] sm:$0xff]  ;;  %vm251_vm4 = vcmask 523264   ;;  %vm431_vm5 = vcmask 130048  }
  0x12   :  { %589 = vmatpush3.bf16.msra.mxu0 %v588_v4  ;;  %v39_v20 = vld [vmem:[%s774_s1] sm:$0xff]  ;;  %v597_v21 = vpack.c.bf16 %v244_v17, %v243_v16  ;;  %v245_v22 = vld [vmem:[%s778_s5 + $0x10] sm:$0xff]  ;;  %v246_v23 = vld [vmem:[%s778_s5 + $0x18] sm:$0xff]  ;;  %s436_s15 = sld [smem:[#allocation3]]  ;;  %s483_s16 = sld [smem:[#allocation3 + $0x2]]  ;;  %vm434_vm6 = vcmask 125952  }
  0x13   :  { %590 = vmatprep.subr.bf16.mxu0 %v630_v3  ;;  %v40_v24 = vld [vmem:[%s774_s1 + $0x8] sm:$0xff]  ;;  %v600_v25 = vpack.c.bf16 %v246_v23, %v245_v22  ;;  %v247_v26 = vld [vmem:[%s778_s5 + $0x20] sm:$0xff]  ;;  %v41_v28 = vld [vmem:[%s774_s1 + $0x10] sm:$0xf]  ;;  %s482_s17 = sld [smem:[#allocation3 + $0x1]]  ;;  %s484_s18 = sld [smem:[#allocation3 + $0x3]] }
  0x14   :  { %v248_v27 = vld [vmem:[%s778_s5 + $0x28] sm:$0xff]  ;;  %v249_v30 = vld [vmem:[%s778_s5 + $0x30] sm:$0xff]  ;;  %v250_v31 = vld [vmem:[%s778_s5 + $0x38] sm:$0xff]  ;;  %vm453_vm7 = vcmask 1040384   ;;  %vm455_vm8 = vcmask 123904  }
  0x15   :  { %v603_v29 = vpack.c.bf16 %v248_v27, %v247_v26  ;;  %v606_v32 = vpack.c.bf16 %v250_v31, %v249_v30  ;;  %v469_v33 = vld [vmem:[%s777_s4] ss:$0 sm:$0xff] }
  0x16   :  { %592 = vmatpush3.bf16.msra.mxu0 %v591_v7  ;;  %v477_v53 = vld [vmem:[%s779_s6] ss:$0 sm:$0xff] }
  0x17   :  { %608 = vmatprep.subr.bf16.mxu0 %v630_v3 }
  0x18   :  { %s445_s19 = scalar_lea.vmem [#allocation2], %s483_s16  ;;  %s438_s6 = scalar_lea.vmem [#allocation2], %s436_s15 }
  0x19   :  { %524 = vmatmul.mubr.msk.f32.vlgmr.msra.gmra.mrb[0].mxu0 %vm49_vm1, %v42_v8  ;;  %s440_s20 = scalar_lea.vmem [#allocation2], %s482_s17  ;;  %s447_s21 = scalar_lea.vmem [#allocation2], %s484_s18 }
  0x1a   :  { %526 = vmatprep.mubr.msk.f32.mxu0 %vm631_vm0, %v632_v6 }
  0x1d   :  { %527 = vmatmul.mubr.msk.f32.gmra.mrb[2].mxu0 %vm49_vm1, %v43_v9 }
  0x1e   :  { %529 = vmatprep.mubr.msk.f32.mxu0 %vm631_vm0, %v632_v6 }
  0x21   :  { %530 = vmatmul.mubr.msk.f32.gmra.mrb[4].mxu0 %vm49_vm1, %v44_v10 }
  0x22   :  { %578 = vmatprep.mubr.msk.f32.mxu0 %vm631_vm0, %v632_v6 }
  0xec   :  { %v125_v11 = vpop.f32.mrb[0].mxu0 }
  0xed   :  { %v525_v12 = vpop.f32.mrb[1].mxu0 }
  0xf0   :  { %v130_v13 = vpop.f32.mrb[2].mxu0 }
  0xf1   :  { %v594_v14 = vpack.c.bf16 %v130_v13, %v125_v11  ;;  %v528_v15 = vpop.f32.mrb[3].mxu0 }
  0xf3   :  { %595 = vmatpush3.bf16.msra.mxu1 %v594_v14 }
  0xf4   :  { %v135_v18 = vpop.f32.mrb[4].mxu0  ;;  %536 = vmatprep.subr.mxu1 %v632_v6 }
  0xf5   :  { %v531_v19 = vpop.f32.mrb[5].mxu0 }
  0xf7   :  { %537 = vmatpush3.msk.msra.mxu1 %vm156_vm2, %v135_v18 }
  0xf8   :  { %539 = vmatmul.mubr.msk.f32.vlgmr.msra.gmra.mrb[0].mxu1 %vm146_vm3, %v39_v20  ;;  %596 = vmatprep.subr.bf16.mxu1 %v630_v3 }
  0xf9   :  { %541 = vmatprep.mubr.msk.f32.mxu1 %vm631_vm0, %v632_v6  ;;  %598 = vmatpush3.bf16.msra.mxu1 %v597_v21 }
  0xfa   :  { %599 = vmatprep.subr.bf16.mxu1 %v630_v3 }
  0xfc   :  { %542 = vmatmul.mubr.msk.f32.gmra.mrb[2].mxu1 %vm146_vm3, %v40_v24 }
  0xfd   :  { %544 = vmatprep.mubr.msk.f32.mxu1 %vm631_vm0, %v632_v6  ;;  %601 = vmatpush3.bf16.msra.mxu1 %v600_v25 }
  0xfe   :  { %602 = vmatprep.subr.bf16.mxu1 %v630_v3 }
 0x100   :  { %545 = vmatmul.mubr.msk.f32.gmra.mrb[4].mxu1 %vm146_vm3, %v41_v28 }
 0x101   :  { %604 = vmatpush3.bf16.msra.mxu1 %v603_v29  ;;  %563 = vmatprep.mubr.msk.f32.mxu1 %vm631_vm0, %v632_v6 }
 0x102   :  { %605 = vmatprep.subr.bf16.mxu1 %v630_v3 }
 0x105   :  { %607 = vmatpush3.bf16.msra.mxu1 %v606_v32 }
 0x1cb   :  { %v226_v34 = vpop.f32.mrb[0].mxu1 }
 0x1cc   :  { %v227_v35 = vadd.f32 %v469_v33, %v226_v34  ;;  %v540_v36 = vpop.f32.mrb[1].mxu1 }
 0x1ce   :  { %v240_v37 = vmax.f32 %v227_v35, 0.0 }
 0x1cf   :  { %v231_v38 = vpop.f32.mrb[2].mxu1 }
 0x1d0   :  { %v232_v39 = vadd.f32 %v469_v33, %v231_v38  ;;  %v543_v40 = vpop.f32.mrb[3].mxu1  ;;  %564 = vmatmul.mubr.msk.f32.vlgmr.msra.gmra.mrb[6].mxu1 %vm251_vm4, %v240_v37 }
 0x1d1   :  { %566 = vmatprep.mubr.msk.f32.mxu1 %vm631_vm0, %v632_v6 }
 0x1d2   :  { %v241_v41 = vmax.f32 %v232_v39, 0.0 }
 0x1d3   :  { %v236_v42 = vpop.f32.mrb[4].mxu1 }
 0x1d4   :  { %567 = vmatmul.mubr.msk.f32.gmra.mrb[8].mxu1 %vm251_vm4, %v241_v41  ;;  %v237_v43 = vadd.f32 %v469_v33, %v236_v42  ;;  %v546_v44 = vpop.f32.mrb[5].mxu1 }
 0x1d5   :  { %569 = vmatprep.mubr.msk.f32.mxu1 %vm631_vm0, %v632_v6 }
 0x1d6   :  { %v242_v45 = vmax.f32 %v237_v43, 0.0 }
 0x1d8   :  { %570 = vmatmul.mubr.msk.f32.gmra.mrb[10].mxu1 %vm251_vm4, %v242_v45 }
 0x2a3   :  { %v327_v46 = vpop.f32.mrb[6].mxu1 }
 0x2a4   :  { %v565_v47 = vpop.f32.mrb[7].mxu1 }
 0x2a7   :  { %v332_v48 = vpop.f32.mrb[8].mxu1 }
 0x2a8   :  { %v609_v49 = vpack.c.bf16 %v332_v48, %v327_v46  ;;  %v568_v50 = vpop.f32.mrb[9].mxu1 }
 0x2aa   :  { %610 = vmatpush3.bf16.msra.mxu0 %v609_v49 }
 0x2ab   :  { %v337_v51 = vpop.f32.mrb[10].mxu1  ;;  %576 = vmatprep.subr.mxu0 %v632_v6 }
 0x2ac   :  { %v571_v52 = vpop.f32.mrb[11].mxu1 }
 0x2ae   :  { %577 = vmatpush3.msk.msra.mxu0 %vm156_vm2, %v337_v51 }
 0x2af   :  { %579 = vmatmul.mubr.msk.f32.vlgmr.msra.gmra.mrb[6].mxu0 %vm146_vm3, %v39_v20 }
 0x2b0   :  { %581 = vmatprep.mubr.msk.f32.mxu0 %vm631_vm0, %v632_v6 }
 0x2b3   :  { %582 = vmatmul.mubr.msk.f32.gmra.mrb[8].mxu0 %vm146_vm3, %v40_v24 }
 0x2b4   :  { %584 = vmatprep.mubr.msk.f32.mxu0 %vm631_vm0, %v632_v6 }
 0x2b7   :  { %585 = vmatmul.mubr.msk.f32.gmra.mrb[10].mxu0 %vm146_vm3, %v41_v28 }
 0x382   :  { %v417_v54 = vpop.f32.mrb[6].mxu0 }
 0x383   :  { %v418_v55 = vadd.f32 %v477_v53, %v417_v54  ;;  %v580_v56 = vpop.f32.mrb[7].mxu0 }
 0x385   :  { %432 = vst.msk [vmem:[#allocation2] sm:$0xff] %vm431_vm5, %v418_v55 }
 0x386   :  { %v422_v57 = vpop.f32.mrb[8].mxu0 }
 0x387   :  { %v423_v58 = vadd.f32 %v477_v53, %v422_v57  ;;  %v583_v59 = vpop.f32.mrb[9].mxu0 }
 0x389   :  { %433 = vst.msk [vmem:[#allocation2 + $0x8] sm:$0xff] %vm431_vm5, %v423_v58 }
 0x38a   :  { %v427_v60 = vpop.f32.mrb[10].mxu0 }
 0x38b   :  { %v428_v61 = vadd.f32 %v477_v53, %v427_v60  ;;  %v586_v62 = vpop.f32.mrb[11].mxu0 }
 0x38d   :  { %435 = vst.msk [vmem:[#allocation2 + $0x10] sm:$0xf] %vm434_vm6, %v428_v61 }
 0x394   :  { %v446_v63 = vld [vmem:[%s445_s19] sm:$0x1] }
 0x395   :  { %v439_v0 = vld [vmem:[%s438_s6] sm:$0x1] }
 0x396   :  { %v441_v1 = vld [vmem:[%s440_s20] sm:$0x1] }
 0x397   :  { %v448_v2 = vld [vmem:[%s447_s21] sm:$0x1]  ;;  %v442_v4 = vadd.f32 %v441_v1, %v439_v0 }
 0x398   :  { %v449_v3 = vadd.f32 %v448_v2, %v446_v63 }
 0x39a   :  { %v451_v5 = vrot.slane %v449_v3, 7 }
 0x39c   :  { %v454_v6 = vsel %vm453_vm7, %v442_v4, %v451_v5 }
 0x39d   :  { %456 = vst.msk [vmem:[%s780_s7] sm:$0x3] %vm455_vm8, %v454_v6 }
 0x39e   :  { %461 = vsyncpa [#allocation4], 1 }

// kernel: bsal_forward.5
= control target key start
LH: loop header
LB: loop body
LE: loop exit
PB: predicated region body
PF: predicated region fallthrough
CT: control target
= control target key end

     0   :  { %v1100_v0 = vmov 0.0|0.0   ;;  %vm1101_vm0 = vmmov 0   ;;  %v1102_v3 = vmov 0.0   ;;  %vm78_vm1 = vcmask 1040384   ;;  %s1104_s24 = smov 32   ;;  %s1105_s25 = smov 64   ;;  %s1402_s2 = inlined_call_operand.vmem [shape: f32[17,16], index: 2, kind: input, shape index: {}]   ;;  %s1403_s0 = inlined_call_operand.vmem [shape: f32[24,17], index: 0, kind: input, shape index: {}]   ;;  %s1404_s4 = inlined_call_operand.vmem [shape: f32[80,32], index: 4, kind: input, shape index: {}]   ;;  %s1405_s3 = inlined_call_operand.vmem [shape: f32[1,16], index: 3, kind: input, shape index: {}]   ;;  %s1406_s6 = inlined_call_operand.vmem [shape: f32[64,16], index: 6, kind: input, shape index: {}]   ;;  %s1407_s5 = inlined_call_operand.vmem [shape: f32[1,32], index: 5, kind: input, shape index: {}]   ;;  %s1408_s8 = inlined_call_operand.vmem [shape: f32[16,16], index: 8, kind: input, shape index: {}]   ;;  %s1409_s10 = inlined_call_operand.vmem [shape: f32[16,16], index: 10, kind: input, shape index: {}]   ;;  %s1410_s7 = inlined_call_operand.vmem [shape: f32[1,16], index: 7, kind: input, shape index: {}]   ;;  %s1411_s1 = inlined_call_operand.vmem [shape: f32[2,16], index: 1, kind: input, shape index: {}]   ;;  %s1412_s12 = inlined_call_operand.vmem [shape: f32[16,1], index: 12, kind: input, shape index: {}]   ;;  %s1413_s13 = inlined_call_operand.<no memory space> [shape: f32[1,1], index: 13, kind: input, shape index: {}]   ;;  %s1414_s9 = inlined_call_operand.vmem [shape: f32[1,16], index: 9, kind: input, shape index: {}]   ;;  %s1415_s11 = inlined_call_operand.vmem [shape: f32[1,16], index: 11, kind: input, shape index: {}]   ;;  %s1416_s14 = inlined_call_operand.vmem [shape: f32[48,3], index: 14, kind: input, shape index: {}]   ;;  %s1417_s15 = inlined_call_operand.vmem [shape: f32[1,3], index: 15, kind: input, shape index: {}]   ;;  %s1418_s16 = inlined_call_operand.vmem [shape: f32[2,3], index: 16, kind: output, shape index: {}]  }
   0x1   :  { %1420 = sst [smem:[#allocation3_spill]] %s1402_s2  ;;  %1029 = vmatprep.subr.bf16.mxu0 %v1100_v0  ;;  %935 = vmatprep.mubr.msk.f32.mxu0 %vm1101_vm0, %v1102_v3  ;;  %v55_v6 = vld [vmem:[%s1403_s0] sm:$0xff]  ;;  %vm68_vm2 = vcmask 138240   ;;  %v56_v7 = vld [vmem:[%s1403_s0 + $0x8] sm:$0xff]  ;;  %v57_v8 = vld [vmem:[%s1403_s0 + $0x10] sm:$0xff]  ;;  %vm167_vm3 = vcmask 1043456  }
   0x2   :  { %s1421_s23 = sld [smem:[#allocation3_spill]]  ;;  %1032 = vmatprep.subr.bf16.mxu1 %v1100_v0  ;;  %964 = vmatprep.mubr.msk.f32.mxu1 %vm1101_vm0, %v1102_v3  ;;  %v228_v9 = vld [vmem:[%s1404_s4] sm:$0xff]  ;;  %v229_v10 = vld [vmem:[%s1404_s4 + $0x8] sm:$0xff]  ;;  %v230_v14 = vld [vmem:[%s1404_s4 + $0x10] sm:$0xff]  ;;  %s1103_s0 = smov 48   ;;  %vm201_vm4 = vcmask 1046528  }
   0x3   :  { %v1033_v11 = vpack.c.bf16 %v229_v10, %v228_v9  ;;  %v231_v15 = vld [vmem:[%s1404_s4 + $0x18] sm:$0xff]  ;;  %v866_v16 = vld [vmem:[%s1405_s3] ss:$0 sm:$0xff]  ;;  %v233_v22 = vld [vmem:[%s1404_s4 + $0x28] sm:$0xff]  ;;  %vm192_vm5 = vcmask 130048   ;;  %vm194_vm6 = vcmask 261120  }
   0x4   :  { %v1036_v18 = vpack.c.bf16 %v231_v15, %v230_v14  ;;  %v232_v21 = vld [vmem:[%s1404_s4 + $0x20] sm:$0xff]  ;;  %v234_v30 = vld [vmem:[%s1404_s4 + $0x30] sm:$0xff]  ;;  %v235_v31 = vld [vmem:[%s1404_s4 + $0x38] sm:$0xff]  ;;  %vm196_vm7 = vcmask 392192   ;;  %vm198_vm8 = vcmask 523264   ;;  %vm226_vm9 = vcmask 1041408  }
   0x5   :  { %1034 = vmatpush3.bf16.msra.mxu1 %v1033_v11  ;;  %v1039_v24 = vpack.c.bf16 %v233_v22, %v232_v21  ;;  %v1042_v32 = vpack.c.bf16 %v235_v31, %v234_v30  ;;  %v236_v38 = vld [vmem:[%s1404_s4 + $0x40] sm:$0xff]  ;;  %v237_v39 = vld [vmem:[%s1404_s4 + $0x48] sm:$0xff]  ;;  %s1106_s4 = smov 16   ;;  %vm245_vm10 = vcmask 654336   ;;  %v332_v9 = vld [vmem:[%s1406_s6 + $0x10] sm:$0xff]  ;;  %vm860_vm11 = vcmask 17408  }
   0x6   :  { %1035 = vmatprep.subr.bf16.mxu1 %v1100_v0  ;;  %v1045_v41 = vpack.c.bf16 %v237_v39, %v236_v38  ;;  %v333_v11 = vld [vmem:[%s1406_s6 + $0x18] sm:$0xff]  ;;  %v335_v14 = vld [vmem:[%s1406_s6 + $0x28] sm:$0xff]  ;;  %v1340_v39 = vld [vmem:[%s1411_s1] sm:$0x3] }
   0x8   :  { %v58_v1 = vld [vmem:[%s1421_s23] sm:$0xff]  ;;  %v59_v2 = vld [vmem:[%s1421_s23 + $0x8] sm:$0xff]  ;;  %v60_v5 = vld [vmem:[%s1421_s23 + $0x10] sm:$0x1] }
   0x9   :  { %v1030_v4 = vpack.c.bf16 %v59_v2, %v58_v1  ;;  %1037 = vmatpush3.bf16.msra.mxu1 %v1036_v18 }
   0xa   :  { %1038 = vmatprep.subr.bf16.mxu1 %v1100_v0 }
   0xb   :  { %1031 = vmatpush3.bf16.msra.mxu0 %v1030_v4 }
   0xc   :  { %933 = vmatprep.subr.mxu0 %v1102_v3 }
   0xd   :  { %1040 = vmatpush3.bf16.msra.mxu1 %v1039_v24 }
   0xe   :  { %1041 = vmatprep.subr.bf16.mxu1 %v1100_v0 }
   0xf   :  { %934 = vmatpush3.msk.msra.mxu0 %vm78_vm1, %v60_v5 }
  0x10   :  { %936 = vmatmul.mubr.msk.f32.vlgmr.msra.gmra.mrb[0].mxu0 %vm68_vm2, %v55_v6  ;;  %1047 = vmatprep.subr.bf16.mxu0 %v1100_v0 }
  0x11   :  { %938 = vmatprep.mubr.msk.f32.mxu0 %vm1101_vm0, %v1102_v3  ;;  %1043 = vmatpush3.bf16.msra.mxu1 %v1042_v32  ;;  %v502_v32 = vld [vmem:[%s1409_s10] sm:$0xff] }
  0x12   :  { %1044 = vmatprep.subr.bf16.mxu1 %v1100_v0 }
  0x14   :  { %939 = vmatmul.mubr.msk.f32.gmra.mrb[2].mxu0 %vm68_vm2, %v56_v7  ;;  %v330_v7 = vld [vmem:[%s1406_s6] sm:$0xff] }
  0x15   :  { %941 = vmatprep.mubr.msk.f32.mxu0 %vm1101_vm0, %v1102_v3  ;;  %1046 = vmatpush3.bf16.msra.mxu1 %v1045_v41  ;;  %v586_v41 = vld [vmem:[%s1412_s12 + $0x8] sm:$0xff] }
  0x16   :  { %1065 = vmatprep.subr.bf16.mxu1 %v1100_v0 }
  0x18   :  { %942 = vmatmul.mubr.msk.f32.gmra.mrb[4].mxu0 %vm68_vm2, %v57_v8  ;;  %v331_v8 = vld [vmem:[%s1406_s6 + $0x8] sm:$0xff] }
  0x19   :  { %983 = vmatprep.mubr.msk.f32.mxu0 %vm1101_vm0, %v1102_v3  ;;  %v1048_v10 = vpack.c.bf16 %v331_v8, %v330_v7 }
  0x1b   :  { %1049 = vmatpush3.bf16.msra.mxu0 %v1048_v10  ;;  %v774_v10 = vld [vmem:[%s1416_s14] sm:$0xff] }
  0x1c   :  { %1050 = vmatprep.subr.bf16.mxu0 %v1100_v0 }
  0xe3   :  { %v148_v12 = vpop.f32.mrb[0].mxu0 }
  0xe4   :  { %v937_v13 = vpop.f32.mrb[1].mxu0  ;;  %v149_v28 = vadd.f32 %v866_v16, %v148_v12  ;;  %v1051_v12 = vpack.c.bf16 %v333_v11, %v332_v9  ;;  %v775_v11 = vld [vmem:[%s1416_s14 + $0x8] sm:$0xff] }
  0xe5   :  { %v334_v13 = vld [vmem:[%s1406_s6 + $0x20] sm:$0xff] }
  0xe6   :  { %v162_v35 = vmax.f32 %v149_v28, 0.0  ;;  %1052 = vmatpush3.bf16.msra.mxu0 %v1051_v12  ;;  %v1054_v15 = vpack.c.bf16 %v335_v14, %v334_v13  ;;  %v776_v12 = vld [vmem:[%s1416_s14 + $0x10] sm:$0xff]  ;;  %v1072_v13 = vpack.c.bf16 %v775_v11, %v774_v10  ;;  %v777_v14 = vld [vmem:[%s1416_s14 + $0x18] sm:$0xff] }
  0xe7   :  { %v153_v17 = vpop.f32.mrb[2].mxu0  ;;  %1053 = vmatprep.subr.bf16.mxu0 %v1100_v0 }
  0xe8   :  { %v154_v19 = vadd.f32 %v866_v16, %v153_v17  ;;  %v940_v20 = vpop.f32.mrb[3].mxu0  ;;  %v337_v17 = vld [vmem:[%s1406_s6 + $0x38] sm:$0xff] }
  0xea   :  { %v163_v25 = vmax.f32 %v154_v19, 0.0  ;;  %1055 = vmatpush3.bf16.msra.mxu0 %v1054_v15  ;;  %v871_v19 = vld [vmem:[%s1407_s5] ss:$0 sm:$0xff]  ;;  %v1075_v15 = vpack.c.bf16 %v777_v14, %v776_v12 }
  0xeb   :  { %v158_v23 = vpop.f32.mrb[4].mxu0  ;;  %1056 = vmatprep.subr.bf16.mxu0 %v1100_v0 }
  0xec   :  { %v159_v26 = vadd.f32 %v866_v16, %v158_v23  ;;  %v943_v27 = vpop.f32.mrb[5].mxu0  ;;  %v168_v33 = vrot.slane %v163_v25, 4  ;;  %v336_v16 = vld [vmem:[%s1406_s6 + $0x30] sm:$0xff] }
  0xed   :  { %v1057_v18 = vpack.c.bf16 %v337_v17, %v336_v16  ;;  %v778_v16 = vld [vmem:[%s1416_s14 + $0x20] sm:$0xff]  ;;  %v779_v17 = vld [vmem:[%s1416_s14 + $0x28] sm:$0xff] }
  0xee   :  { %v164_v29 = vmax.f32 %v159_v26, 0.0  ;;  %v420_v26 = vld [vmem:[%s1408_s8 + $0x8] sm:$0xff] }
  0xef   :  { %1058 = vmatpush3.bf16.msra.mxu0 %v1057_v18  ;;  %v1078_v18 = vpack.c.bf16 %v779_v17, %v778_v16 }
  0xf0   :  { %v169_v34 = vrot.slane %v164_v29, 4  ;;  %1059 = vmatprep.subr.bf16.mxu0 %v1100_v0 }
  0xf2   :  { %v170_v36 = vsel %vm167_vm3, %v168_v33, %v169_v34  ;;  %v174_v37 = vmax.f32 %v163_v25, %v169_v34  ;;  %v419_v25 = vld [vmem:[%s1408_s8] sm:$0xff]  ;;  %v503_v33 = vld [vmem:[%s1409_s10 + $0x8] sm:$0xff] }
  0xf3   :  { %v173_v40 = vmax.f32 %v162_v35, %v170_v36  ;;  %v1060_v30 = vpack.c.bf16 %v420_v26, %v419_v25  ;;  %v873_v34 = vld [vmem:[%s1410_s7] ss:$0 sm:$0xff]  ;;  %v1063_v36 = vpack.c.bf16 %v503_v33, %v502_v32 }
  0xf4   :  { %v211_v42 = vrot.slane %v174_v37, 3  ;;  %v207_v43 = vrot.slane %v174_v37, 2  ;;  %v215_v44 = vrot.slane %v174_v37, 4  ;;  %v202_v47 = vrot.slane %v174_v37, 1 }
  0xf5   :  { %v180_v45 = vrot.slane %v173_v40, 2  ;;  %v176_v46 = vrot.slane %v173_v40, 1  ;;  %v188_v49 = vrot.slane %v173_v40, 4  ;;  %v184_v50 = vrot.slane %v173_v40, 3 }
  0xf6   :  { %212 = vrot.lane.b32.xlu1 %v211_v42, %s1103_s0  ;;  %208 = vrot.lane.b32.xlu0 %v207_v43, %s1104_s24  ;;  %v21_v43 = vstv %s1413_s13 }
  0xf7   :  { %v203_v48 = vsel %vm201_vm4, %v176_v46, %v202_v47  ;;  %22 = vst [vmem:[#allocation2] sm:$0x1] %v21_v43 }
  0xfa   :  { %216 = vrot.lane.b32.xlu1 %v215_v44, %s1105_s25  ;;  %181 = vrot.lane.b32.xlu0 %v180_v45, %s1104_s24  ;;  %v875_v44 = vld [vmem:[%s1414_s9] ss:$0 sm:$0xff] }
  0xfe   :  { %177 = vrot.lane.b32.xlu1 %v176_v46, %s1106_s4  ;;  %204 = vrot.lane.b32.xlu0 %v203_v48, %s1106_s4  ;;  %v877_v48 = vld [vmem:[%s1415_s11] ss:$0 sm:$0xff] }
 0x102   :  { %189 = vrot.lane.b32.xlu1 %v188_v49, %s1105_s25  ;;  %185 = vrot.lane.b32.xlu0 %v184_v50, %s1103_s0 }
 0x168   :  { %v213_v51 = vpop.permute.xlu1 %212  ;;  %v209_v52 = vpop.permute.xlu0 %208 }
 0x16c   :  { %v217_v53 = vpop.permute.xlu1 %216  ;;  %v182_v54 = vpop.permute.xlu0 %181 }
 0x170   :  { %v178_v55 = vpop.permute.xlu1 %177  ;;  %v205_v56 = vpop.permute.xlu0 %204 }
 0x171   :  { %v193_v57 = vsel %vm192_vm5, %v173_v40, %v178_v55  ;;  %v219_v58 = vsel %vm192_vm5, %v173_v40, %v205_v56  ;;  %v585_v40 = vld [vmem:[%s1412_s12] sm:$0xff] }
 0x172   :  { %v220_v59 = vsel %vm194_vm6, %v219_v58, %v209_v52  ;;  %v195_v62 = vsel %vm194_vm6, %v193_v57, %v182_v54  ;;  %v1066_v42 = vpack.c.bf16 %v586_v41, %v585_v40  ;;  %v1107_v54 = vmov 0   ;;  %v879_v57 = vld [vmem:[#allocation2] ss:$0 sm:$0xff] }
 0x173   :  { %v221_v60 = vsel %vm196_vm7, %v220_v59, %v213_v51  ;;  %1089 = vset.pattern.permute.xlu0 %v1107_v54  ;;  %1088 = vset.pattern.permute.xlu1 %v1107_v54 }
 0x174   :  { %v190_v61 = vpop.permute.xlu1 %189  ;;  %v186_v63 = vpop.permute.xlu0 %185  ;;  %v222_v1 = vsel %vm198_vm8, %v221_v60, %v217_v53 }
 0x175   :  { %v197_v2 = vsel %vm196_vm7, %v195_v62, %v186_v63  ;;  %v224_v4 = vrot.slane %v222_v1, 4 }
 0x176   :  { %v199_v5 = vsel %vm198_vm8, %v197_v2, %v190_v61 }
 0x177   :  { %v227_v6 = vsel %vm226_vm9, %v199_v5, %v224_v4 }
 0x178   :  { %965 = vmatmul.mubr.msk.f32.vlgmr.msra.gmra.mrb[0].mxu1 %vm245_vm10, %v227_v6 }
 0x179   :  { %1004 = vmatprep.mubr.msk.f32.mxu1 %vm1101_vm0, %v1102_v3  ;;  %1067 = vmatpush3.bf16.msra.mxu1 %v1066_v42 }
 0x17a   :  { %1071 = vmatprep.subr.bf16.mxu1 %v1100_v0 }
 0x24b   :  { %v315_v20 = vpop.f32.mrb[0].mxu1 }
 0x24c   :  { %v316_v21 = vadd.f32 %v871_v19, %v315_v20  ;;  %v966_v22 = vpop.f32.mrb[1].mxu1 }
 0x24e   :  { %v319_v23 = vmax.f32 %v316_v21, 0.0 }
 0x250   :  { %v321_v24 = vrot.slane %v319_v23, 1 }
 0x252   :  { %322 = vrot.lane.b32.xlu0 %v321_v24, %s1104_s24 }
 0x2c4   :  { %v323_v27 = vpop.permute.xlu0 %322 }
 0x2c5   :  { %v325_v28 = vsel %vm194_vm6, %v319_v23, %v323_v27 }
 0x2c6   :  { %v327_v29 = vrot.slane %v325_v28, 1 }
 0x2c8   :  { %v329_v31 = vsel %vm78_vm1, %v325_v28, %v327_v29 }
 0x2c9   :  { %984 = vmatmul.mubr.msk.f32.vlgmr.msra.gmra.mrb[6].mxu0 %vm198_vm8, %v329_v31 }
 0x2ca   :  { %1061 = vmatpush3.bf16.msra.mxu0 %v1060_v30  ;;  %990 = vmatprep.mubr.msk.f32.mxu0 %vm1101_vm0, %v1102_v3 }
 0x2cb   :  { %1062 = vmatprep.subr.bf16.mxu0 %v1100_v0 }
 0x39c   :  { %v414_v35 = vpop.f32.mrb[6].mxu0 }
 0x39d   :  { %v1331_v37 = vadd.f32 %v873_v34, %v414_v35  ;;  %v985_v38 = vpop.f32.mrb[7].mxu0 }
 0x39f   :  { %991 = vmatmul.mubr.msk.f32.vlgmr.msra.gmra.mrb[8].mxu0 %vm192_vm5, %v1331_v37 }
 0x3a0   :  { %1064 = vmatpush3.bf16.msra.mxu0 %v1063_v36  ;;  %997 = vmatprep.mubr.msk.f32.mxu0 %vm1101_vm0, %v1102_v3 }
 0x3a1   :  { %1068 = vmatprep.subr.bf16.mxu0 %v1100_v0 }
 0x3a3   :  { %998 = vmatmul.mubr.msk.f32.vlgmr.msra.gmra.mrb[10].mxu0 %vm192_vm5, %v1340_v39 }
 0x3a4   :  { %1011 = vmatprep.mubr.msk.f32.mxu0 %vm1101_vm0, %v1102_v3  ;;  %1070 = vmatpush3.bf16.msra.mxu0 %v1066_v42 }
 0x472   :  { %v497_v45 = vpop.f32.mrb[8].mxu0 }
 0x473   :  { %v498_v46 = vadd.f32 %v875_v44, %v497_v45  ;;  %v992_v47 = vpop.f32.mrb[9].mxu0 }
 0x475   :  { %1090 = vtanh.f32 %v498_v46 }
 0x476   :  { %v580_v49 = vpop.f32.mrb[10].mxu0 }
 0x477   :  { %v581_v50 = vadd.f32 %v877_v48, %v580_v49  ;;  %v999_v51 = vpop.f32.mrb[11].mxu0 }
 0x479   :  { %1092 = vtanh.f32 %v581_v50 }
 0x47f   :  { %v1091_v52 = vpop.eup %1090 }
 0x480   :  { %1005 = vmatmul.mubr.msk.f32.vlgmr.msra.gmra.mrb[2].mxu1 %vm192_vm5, %v1091_v52 }
 0x481   :  { %1026 = vmatprep.mubr.msk.f32.mxu1 %vm1101_vm0, %v1102_v3  ;;  %1073 = vmatpush3.bf16.msra.mxu1 %v1072_v13 }
 0x482   :  { %1074 = vmatprep.subr.bf16.mxu1 %v1100_v0 }
 0x483   :  { %v1093_v53 = vpop.eup %1092 }
 0x484   :  { %1012 = vmatmul.mubr.msk.f32.vlgmr.msra.gmra.mrb[12].mxu0 %vm192_vm5, %v1093_v53 }
 0x485   :  { %1076 = vmatpush3.bf16.msra.mxu1 %v1075_v15 }
 0x486   :  { %1077 = vmatprep.subr.bf16.mxu1 %v1100_v0  ;;  %v882_v0 = vld [vmem:[%s1417_s15] ss:$0 sm:$0xff] }
 0x489   :  { %1079 = vmatpush3.bf16.msra.mxu1 %v1078_v18 }
 0x553   :  { %v663_v55 = vpop.f32.mrb[2].mxu1 }
 0x554   :  { %v1006_v56 = vpop.f32.mrb[3].mxu1  ;;  %v664_v59 = vadd.f32 %v879_v57, %v663_v55 }
 0x557   :  { %v736_v58 = vpop.f32.mrb[12].mxu0 }
 0x558   :  { %v737_v60 = vadd.f32 %v879_v57, %v736_v58  ;;  %v1013_v61 = vpop.f32.mrb[13].mxu0 }
 0x55a   :  { %v740_v62 = vmax.f32 %v664_v59, %v737_v60 }
 0x55c   :  { %v741_v63 = vsub.f32 %v664_v59, %v740_v62  ;;  %v744_v1 = vsub.f32 %v737_v60, %v740_v62 }
 0x55e   :  { %v742_v2 = vmul.f32 1.442695, %v741_v63  ;;  %v745_v4 = vmul.f32 1.442695, %v744_v1 }
 0x560   :  { %1094 = vpow2.f32 %v742_v2 }
 0x561   :  { %1096 = vpow2.f32 %v745_v4 }
 0x56a   :  { %v1095_v3 = vpop.eup %1094 }
 0x56b   :  { %v1097_v5 = vpop.eup %1096 }
 0x56c   :  { %v747_v6 = vadd.f32 %v1097_v5, %v1095_v3 }
 0x56e   :  { %1098 = vrcp.f32 %v747_v6 }
 0x578   :  { %v1099_v7 = vpop.eup %1098 }
 0x579   :  { %v751_v8 = vmul.f32 %v1099_v7, %v1097_v5  ;;  %v750_v9 = vmul.f32 %v1099_v7, %v1095_v3 }
 0x57b   :  { %760 = vperm.xlu0 %1089, %v751_v8   ;;  %754 = vperm.xlu1 %1088, %v750_v9  }
 0x57f   :  { %765 = vrot.lane.b32.xlu1 %v1340_v39, %s1106_s4 }
 0x5fa   :  { %v761_v19 = vpop.permute.xlu0 %760  ;;  %v755_v20 = vpop.permute.xlu1 %754 }
 0x5fb   :  { %v763_v21 = vmul.f32 %v761_v19, %v1340_v39  ;;  %v757_v22 = vmul.f32 %v755_v20, %v1331_v37 }
 0x5fd   :  { %v764_v23 = vadd.f32 %v763_v21, %v757_v22 }
 0x5fe   :  { %v766_v24 = vpop.permute.xlu1 %765 }
 0x5ff   :  { %769 = vrot.lane.b32.xlu1 %v764_v23, %s1104_s24  ;;  %v772_v25 = vsel %vm192_vm5, %v1331_v37, %v766_v24 }
 0x671   :  { %v770_v26 = vpop.permute.xlu1 %769 }
 0x672   :  { %v773_v27 = vsel %vm194_vm6, %v772_v25, %v770_v26 }
 0x673   :  { %1027 = vmatmul.mubr.msk.f32.vlgmr.msra.gmra.mrb[4].mxu1 %vm196_vm7, %v773_v27 }
 0x746   :  { %v856_v28 = vpop.f32.mrb[4].mxu1 }
 0x747   :  { %v857_v29 = vadd.f32 %v882_v0, %v856_v28  ;;  %v1028_v30 = vpop.f32.mrb[5].mxu1 }
 0x749   :  { %861 = vst.msk [vmem:[%s1418_s16] sm:$0x3] %vm860_vm11, %v857_v29 }

</bundles_post_ra>
